<compile_context>
chip_gen: v6e
topology: v6e:2x2x1
jax: 0.10.0
libtpu: 0.0.40
codegen_flags: <defaults>
</compile_context>

<pallas_src>
import functools
import math

import jax
import jax.numpy as jnp
from jax.experimental import pallas as pl
from jax.experimental.pallas import tpu as pltpu


def _sdpa_kernel(q_ref, k_ref, v_ref, e_ref, ctx_ref, escore_ref, *,
                 scale, n, d_k, mxu_dtype):
    gb = q_ref.shape[0]

    # Lane-dense (gb, n*d_k) / (gb, n*n) loads; unfold to per-head matrices
    # only for the batched matmuls and the softmax reduction.
    q = q_ref[...].reshape(gb, n, d_k)
    k = k_ref[...].reshape(gb, n, d_k)
    v = v_ref[...].reshape(gb, n, d_k)
    e = e_ref[...].astype(jnp.float32).reshape(gb, n, n)

    # s_ = Q @ K^T * (1/sqrt(d_k)), batched over the gb heads in this block.
    # Contraction is on the trailing dim of both operands (no XLU transpose);
    # operands stay in the input dtype so e_ keeps full precision; f32 accum.
    s_ = jnp.einsum("gnd,gmd->gnm", q, k, preferred_element_type=jnp.float32)
    e_ = (s_ * scale) * e

    # Numerically stable softmax over the last axis. Exact division: the
    # approx EUP reciprocal added ~1e-3 error to ctx and buys nothing here.
    m = jnp.max(e_, axis=-1, keepdims=True)
    p = jnp.exp(e_ - m)
    s = p / jnp.sum(p, axis=-1, keepdims=True)

    # context = softmax(e_) @ V with bf16 MXU operands (f32 accumulation):
    # avoids the ~3x multi-pass f32 MXU emulation (review item; ctx-only).
    ctx = jnp.einsum("gnm,gmd->gnd", s.astype(mxu_dtype), v.astype(mxu_dtype),
                     preferred_element_type=jnp.float32)

    # Lane-dense stores: dense vst / dense HBM writeback DMAs.
    ctx_ref[...] = ctx.reshape(gb, n * d_k).astype(ctx_ref.dtype)
    escore_ref[...] = e_.reshape(gb, n * n).astype(escore_ref.dtype)


def _vmem_capacity_bytes():
    """Physical VMEM per core; conservative (v7x-sized) fallback off-TPU."""
    try:
        return int(pltpu.get_tpu_info().vmem_capacity_bytes)
    except Exception:
        return 64 << 20


def _pick_head_block(G, per_head_io_bytes):
    """Heads per grid step (Gb) and the padded head count G_pad.

    v5e/v6e (128 MiB VMEM, single TensorCore): one block as big as a ~28 MiB
    double-buffered I/O budget allows (often the whole problem in one step —
    grid steps cost ~0.35 us each and per-step compute here is tiny).
    v7x-class (64 MiB VMEM, two TensorCores): per-step double-buffered I/O
    set <= ~14 MiB and an even step count so both TCs get balanced work.
    """
    big_vmem = _vmem_capacity_bytes() >= (96 << 20)
    io_budget = (28 << 20) if big_vmem else (14 << 20)
    cap = max(8, io_budget // (2 * per_head_io_bytes))   # /2: double buffering

    min_steps = 1 if (big_vmem or G < 2) else 2          # 2-TC parts: >= 2 steps
    steps = max(min_steps, pl.cdiv(G, cap))
    if (not big_vmem) and steps > 1 and steps % 2:
        steps += 1                                       # even steps for 2 TCs

    if steps == 1:
        return G, G                                      # block == full array

    Gb = pl.cdiv(G, steps)
    Gb = pl.cdiv(Gb, 8) * 8                              # sublane-tile multiple
    steps = pl.cdiv(G, Gb)
    if (not big_vmem) and steps > 1 and steps % 2:
        steps += 1
    return Gb, Gb * steps


def scaled_dot_product_attention(Q, K, V, E):
    """Pallas implementation of ScaledDotProductAttention.forward.

    Q, K, V: [B, T, H, N, d_k];  E: [B, T, H, N, N]
    Returns (context [B, T, H, N, d_k], e_ [B, T, H, N, N])
    """
    B, T, H, N, d_k = Q.shape
    G = B * T * H
    qk_cols = N * d_k
    e_cols = N * N

    # Lane-dense packing: last dims N*d_k / N*N instead of 32- / 16-wide tiles.
    q = Q.reshape(G, qk_cols)
    k = K.reshape(G, qk_cols)
    v = V.reshape(G, qk_cols)
    e = E.reshape(G, e_cols)

    itemsize = jnp.dtype(Q.dtype).itemsize
    per_head_io_bytes = (4 * qk_cols + 2 * e_cols) * itemsize  # q,k,v,ctx + e,e_
    Gb, G_pad = _pick_head_block(G, per_head_io_bytes)

    # Non-divisor G: zero-pad the head axis, slice outputs back afterwards.
    if G_pad != G:
        pad = G_pad - G
        q = jnp.pad(q, ((0, pad), (0, 0)))
        k = jnp.pad(k, ((0, pad), (0, 0)))
        v = jnp.pad(v, ((0, pad), (0, 0)))
        e = jnp.pad(e, ((0, pad), (0, 0)))

    steps = G_pad // Gb
    # Last dims equal the full packed array dims; the head axis (multiple of 8
    # or the full array) carries the tiling, so (8, 128) is always satisfied.
    head_spec = pl.BlockSpec((Gb, qk_cols), lambda g: (g, 0))
    score_spec = pl.BlockSpec((Gb, e_cols), lambda g: (g, 0))

    in_dtype = jnp.dtype(Q.dtype)
    mxu_dtype = jnp.bfloat16 if in_dtype == jnp.float32 else in_dtype
    kernel = functools.partial(_sdpa_kernel, scale=1.0 / math.sqrt(d_k),
                               n=N, d_k=d_k, mxu_dtype=mxu_dtype)

    # VMEM limit: double-buffered I/O blocks + f32 intermediates + headroom,
    # capped per generation (<= 48 MiB on 64-MiB-VMEM parts; no 32 MiB floor).
    block_io = Gb * per_head_io_bytes
    block_tmp = Gb * (4 * e_cols + 2 * qk_cols) * 4
    big_vmem = _vmem_capacity_bytes() >= (96 << 20)
    vmem_limit = int(min((64 << 20) if big_vmem else (48 << 20),
                         2 * block_io + block_tmp + (8 << 20)))

    flops = 4 * G * N * N * d_k                 # QK^T + PV matmuls
    transcendentals = G * N * N                 # exp per score element
    bytes_accessed = (4 * G * qk_cols + 2 * G * e_cols) * itemsize

    ctx, escore = pl.pallas_call(
        kernel,
        out_shape=(
            jax.ShapeDtypeStruct((G_pad, qk_cols), Q.dtype),
            jax.ShapeDtypeStruct((G_pad, e_cols), Q.dtype),
        ),
        grid_spec=pltpu.PrefetchScalarGridSpec(
            num_scalar_prefetch=0,
            grid=(steps,),
            in_specs=[head_spec, head_spec, head_spec, score_spec],
            out_specs=[head_spec, score_spec],
        ),
        compiler_params=pltpu.CompilerParams(
            dimension_semantics=("parallel",),
            vmem_limit_bytes=vmem_limit,
        ),
        cost_estimate=pl.CostEstimate(
            flops=int(flops),
            transcendentals=int(transcendentals),
            bytes_accessed=int(bytes_accessed),
        ),
    )(q, k, v, e)

    context = ctx[:G].reshape(B, T, H, N, d_k)
    e_out = escore[:G].reshape(B, T, H, N, N)
    return context, e_out


def _reference(Q, K, V, E):
    d_k = Q.shape[-1]
    s_ = jnp.matmul(Q, jnp.swapaxes(K, -1, -2)) / jnp.sqrt(jnp.float32(d_k))
    e_ = s_ * E
    s = jax.nn.softmax(e_, axis=-1)
    context = jnp.matmul(s, V)
    return context, e_


if __name__ == "__main__":
    # Small shapes consistent with the module's forward contract.
    B, T, H, N, d_k = 2, 4, 2, 16, 32
    key = jax.random.PRNGKey(0)
    kq, kk, kv, ke = jax.random.split(key, 4)

    Q = jax.random.normal(kq, (B, T, H, N, d_k), dtype=jnp.float32)
    K = jax.random.normal(kk, (B, T, H, N, d_k), dtype=jnp.float32)
    V = jax.random.normal(kv, (B, T, H, N, d_k), dtype=jnp.float32)
    E = jax.random.normal(ke, (B, T, H, N, N), dtype=jnp.float32)

    ctx, e_ = scaled_dot_product_attention(Q, K, V, E)
    jax.block_until_ready((ctx, e_))

    ctx_ref, e_ref = _reference(Q, K, V, E)
    assert ctx.shape == (B, T, H, N, d_k)
    assert e_.shape == (B, T, H, N, N)
    # e_: QK^T stays in the input dtype with f32 accumulation and the softmax
    # does not feed it -> tight tolerance.
    assert jnp.allclose(e_, e_ref, atol=1e-4, rtol=1e-4)
    # ctx: the PV matmul uses bf16 MXU operands (f32 accumulation) per the
    # perf review; bf16 operand quantization is ~2^-9 relative, so allow 5e-3.
    assert jnp.allclose(ctx, ctx_ref, atol=5e-3, rtol=5e-3)

    print("KERNEL_OK")
</pallas_src>

<mosaic_0001>
module attributes {stable_mosaic.version = 11 : i64} {
  func.func @_sdpa_kernel(%arg0: i32, %arg1: memref<8x512xf32, #tpu.memory_space<vmem>>, %arg2: memref<8x512xf32, #tpu.memory_space<vmem>>, %arg3: memref<8x512xf32, #tpu.memory_space<vmem>>, %arg4: memref<8x256xf32, #tpu.memory_space<vmem>>, %arg5: memref<8x512xf32, #tpu.memory_space<vmem>>, %arg6: memref<8x256xf32, #tpu.memory_space<vmem>>) attributes {dimension_semantics = [#tpu.dimension_semantics<parallel>], iteration_bounds = array<i64: 2>, scalar_prefetch = 0 : i64, scratch_operands = 0 : i64, tpu.core_type = #tpu.core_type<tc>, window_params = [{transform_indices = @transform_0, window_bounds = array<i64: 8, 512>}, {transform_indices = @transform_1, window_bounds = array<i64: 8, 512>}, {transform_indices = @transform_2, window_bounds = array<i64: 8, 512>}, {transform_indices = @transform_3, window_bounds = array<i64: 8, 256>}, {transform_indices = @transform_4, window_bounds = array<i64: 8, 512>}, {transform_indices = @transform_5, window_bounds = array<i64: 8, 256>}]} {
    %c0 = arith.constant 0 : index
    %c0_0 = arith.constant 0 : index
    %0 = vector.load %arg1[%c0, %c0_0] : memref<8x512xf32, #tpu.memory_space<vmem>>, vector<8x512xf32>
    %1 = vector.shape_cast %0 : vector<8x512xf32> to vector<8x16x32xf32>
    %c0_1 = arith.constant 0 : index
    %c0_2 = arith.constant 0 : index
    %2 = vector.load %arg2[%c0_1, %c0_2] : memref<8x512xf32, #tpu.memory_space<vmem>>, vector<8x512xf32>
    %3 = vector.shape_cast %2 : vector<8x512xf32> to vector<8x16x32xf32>
    %c0_3 = arith.constant 0 : index
    %c0_4 = arith.constant 0 : index
    %4 = vector.load %arg3[%c0_3, %c0_4] : memref<8x512xf32, #tpu.memory_space<vmem>>, vector<8x512xf32>
    %5 = vector.shape_cast %4 : vector<8x512xf32> to vector<8x16x32xf32>
    %c0_5 = arith.constant 0 : index
    %c0_6 = arith.constant 0 : index
    %6 = vector.load %arg4[%c0_5, %c0_6] : memref<8x256xf32, #tpu.memory_space<vmem>>, vector<8x256xf32>
    %7 = vector.shape_cast %6 : vector<8x256xf32> to vector<8x16x16xf32>
    "tpu.trace_start"() <{level = 10 : i32, message = "gnd,gmd->gnm"}> : () -> ()
    %cst = arith.constant dense<0.000000e+00> : vector<8x16x16xf32>
    %8 = tpu.matmul %1, %3, %cst {dimension_numbers = #tpu.dot_dimension_numbers<[2], [2], [1], [1], [0, 0, 0, 1, 1, 1], [0], [0]>} : vector<8x16x32xf32>, vector<8x16x32xf32>, vector<8x16x16xf32> -> vector<8x16x16xf32>
    "tpu.trace_stop"() : () -> ()
    %cst_7 = arith.constant 0.176776692 : f32
    %9 = vector.broadcast %cst_7 : f32 to vector<8x16x16xf32>
    %10 = arith.mulf %8, %9 : vector<8x16x16xf32>
    %11 = arith.mulf %10, %7 : vector<8x16x16xf32>
    %cst_8 = arith.constant dense<0xFF800000> : vector<8x16xf32>
    %12 = vector.multi_reduction <maximumf>, %11, %cst_8 [2] : vector<8x16x16xf32> to vector<8x16xf32>
    %13 = vector.shape_cast %12 : vector<8x16xf32> to vector<8x16x1xf32>
    %14 = vector.broadcast %13 : vector<8x16x1xf32> to vector<8x16x16xf32>
    %15 = arith.subf %11, %14 : vector<8x16x16xf32>
    %16 = math.exp %15 : vector<8x16x16xf32>
    %cst_9 = arith.constant dense<0.000000e+00> : vector<8x16xf32>
    %17 = vector.multi_reduction <add>, %16, %cst_9 [2] : vector<8x16x16xf32> to vector<8x16xf32>
    %18 = vector.shape_cast %17 : vector<8x16xf32> to vector<8x16x1xf32>
    %19 = vector.broadcast %18 : vector<8x16x1xf32> to vector<8x16x16xf32>
    %20 = arith.divf %16, %19 : vector<8x16x16xf32>
    %21 = arith.truncf %20 : vector<8x16x16xf32> to vector<8x16x16xbf16>
    %22 = arith.truncf %5 : vector<8x16x32xf32> to vector<8x16x32xbf16>
    "tpu.trace_start"() <{level = 10 : i32, message = "gnm,gmd->gnd"}> : () -> ()
    %cst_10 = arith.constant dense<0.000000e+00> : vector<8x16x32xf32>
    %23 = tpu.matmul %21, %22, %cst_10 {dimension_numbers = #tpu.dot_dimension_numbers<[2], [1], [1], [2], [0, 0, 0, 1, 1, 2], [0], [0]>} : vector<8x16x16xbf16>, vector<8x16x32xbf16>, vector<8x16x32xf32> -> vector<8x16x32xf32>
    "tpu.trace_stop"() : () -> ()
    %24 = vector.shape_cast %23 : vector<8x16x32xf32> to vector<8x512xf32>
    %c0_11 = arith.constant 0 : index
    %c0_12 = arith.constant 0 : index
    %25 = vector.load %arg5[%c0_11, %c0_12] : memref<8x512xf32, #tpu.memory_space<vmem>>, vector<8x512xf32>
    tpu.vector_store %arg5[%c0_11, %c0_12], %24 {strides = array<i32>} : memref<8x512xf32, #tpu.memory_space<vmem>>, vector<8x512xf32>,
    %26 = vector.shape_cast %11 : vector<8x16x16xf32> to vector<8x256xf32>
    %c0_13 = arith.constant 0 : index
    %c0_14 = arith.constant 0 : index
    %27 = vector.load %arg6[%c0_13, %c0_14] : memref<8x256xf32, #tpu.memory_space<vmem>>, vector<8x256xf32>
    tpu.vector_store %arg6[%c0_13, %c0_14], %26 {strides = array<i32>} : memref<8x256xf32, #tpu.memory_space<vmem>>, vector<8x256xf32>,
    return
  }
  func.func @transform_0(%arg0: i32) -> (i32, i32) {
    %c0_i32 = arith.constant 0 : i32
    %c0_i32_0 = arith.constant 0 : i32
    return %arg0, %c0_i32 : i32, i32
  }
  func.func @transform_1(%arg0: i32) -> (i32, i32) {
    %c0_i32 = arith.constant 0 : i32
    %c0_i32_0 = arith.constant 0 : i32
    return %arg0, %c0_i32 : i32, i32
  }
  func.func @transform_2(%arg0: i32) -> (i32, i32) {
    %c0_i32 = arith.constant 0 : i32
    %c0_i32_0 = arith.constant 0 : i32
    return %arg0, %c0_i32 : i32, i32
  }
  func.func @transform_3(%arg0: i32) -> (i32, i32) {
    %c0_i32 = arith.constant 0 : i32
    %c0_i32_0 = arith.constant 0 : i32
    return %arg0, %c0_i32 : i32, i32
  }
  func.func @transform_4(%arg0: i32) -> (i32, i32) {
    %c0_i32 = arith.constant 0 : i32
    %c0_i32_0 = arith.constant 0 : i32
    return %arg0, %c0_i32 : i32, i32
  }
  func.func @transform_5(%arg0: i32) -> (i32, i32) {
    %c0_i32 = arith.constant 0 : i32
    %c0_i32_0 = arith.constant 0 : i32
    return %arg0, %c0_i32 : i32, i32
  }
}

</mosaic_0001>

<bundles_post_ra>
// kernel: tpu_custom_call.1
= control target key start
LH: loop header
LB: loop body
LE: loop exit
PB: predicated region body
PF: predicated region fallthrough
CT: control target
= control target key end

     0   :  { %s5922_s0 = inlined_call_operand.hbm [shape: f32[16,512], index: 0, kind: input, shape index: {}]   ;;  %s5923_s1 = inlined_call_operand.hbm [shape: f32[16,512], index: 1, kind: input, shape index: {}]   ;;  %s5924_s2 = inlined_call_operand.hbm [shape: f32[16,512], index: 2, kind: input, shape index: {}]   ;;  %s5925_s3 = inlined_call_operand.hbm [shape: f32[16,256], index: 3, kind: input, shape index: {}]   ;;  %s5926_s4 = inlined_call_operand.hbm [shape: f32[16,512], index: 4, kind: output, shape index: {0}]   ;;  %s5927_s5 = inlined_call_operand.hbm [shape: f32[16,256], index: 5, kind: output, shape index: {1}]  }
   0x1   :  { %5942 = sst [smem:[#allocation26_spill]] %s5922_s0 }
   0x2   :  { %5943 = sst [smem:[#allocation27_spill]] %s5923_s1 }
   0x3   :  { %11 = vsyncpa [#allocation3], 0 }
   0x4   :  { %13 = vsyncpa [#allocation3 + $0x1], 0 }
   0x5   :  { %14 = vsyncpa [#allocation6], 0 }
   0x6   :  { %16 = vsyncpa [#allocation6 + $0x1], 0 }
   0x7   :  { %17 = vsyncpa [#allocation9], 0 }
   0x8   :  { %19 = vsyncpa [#allocation9 + $0x1], 0 }
   0x9   :  { %20 = vsyncpa [#allocation4], 0 }
   0xa   :  { %22 = vsyncpa [#allocation4 + $0x1], 0 }
   0xb   :  { %23 = vsyncpa [#allocation12], 0 }
   0xc   :  { %25 = vsyncpa [#allocation12 + $0x1], 0  ;;  %s4424_s18 = smov 0   ;;  %s4426_s19 = smov 0  }
   0xd   :  { %s4428_s20 = smov 0   ;;  %s4430_s21 = smov 0  }
   0xe LB: > { %5944 = sst [smem:[#allocation18_spill]] %s4371_s20  ;;  %s4445_s22 = sadd.s32 4294967295, %s4375_s21   ;;  %s4375_s21 = sphi %s4430_s21, %s5983_s21   ;;  %s4371_s20 = sphi %s4428_s20, %s5985_s20   ;;  %s4367_s19 = sphi %s4426_s19, %s5987_s19   ;;  %s4363_s18 = sphi %s4424_s18, %s5986_s18  }
   0xf   : > { %s3791_s23 = sadd.s32 4294967294, %s4375_s21   ;;  %s4449_s24 = sadd.s32 1, %s4375_s21  }
  0x10   : > { %5945 = sst [smem:[#allocation19_spill]] %s4449_s24  ;;  %s38_s25 = sadd.s32 1, %s4371_s20 }
  0x11   : > { %s35_s26 = ssub.s32 %s4375_s21, %s4449_s24  ;;  %p45_p0 = scmp.ne.s32.totalorder %s4371_s20, %s4367_s19 }
  0x12   : > { %p36_p1 = scmp.eq.s32.totalorder %s35_s26, 0  ;;  %p46_p2 = scmp.eq.s32.totalorder %s4375_s21, 0 }
  0x13   : > { %p51_p3 = scmp.ne.s32.totalorder %s4367_s19, %s4363_s18  ;;  %p52_p4 = scmp.eq.s32.totalorder %s4445_s22, 0 }
  0x14   : > { %s4461_s27 = scalar_select %p36_p1, %s4371_s20, %s38_s25  }
  0x15   : > { %p47_p5 = por %p46_p2, %p45_p0  ;;  %p4463_p6 = por %p52_p4, %p51_p3 }
  0x16   : > { %5946 = sst [smem:[#allocation20_spill]] %s4461_s27  ;;  %p153_p7 = scmp.eq.s32.totalorder %s4445_s22, 1 }
  0x17   : > { %s5947_s28 = scalar_select %p4463_p6, 1, 0 }
  0x18   : > { %p159_p8 = scmp.eq.s32.totalorder %s3791_s23, 1  ;;  %p4051_p10 = scmp.lt.s32.totalorder %s4375_s21, 2 }
  0x19   : > { %p4470_p11 = por %p153_p7, %p45_p0  ;;  %s4479_s6 = sand.u32 1, %s4371_s20  }
  0x1a   : > { %p4474_p12 = por %p159_p8, %p51_p3  ;;  %s4482_s7 = sshll.u32 %s4375_s21, 9 }
  0x1b   : > { %s5948_s29 = scalar_select %p4470_p11, 1, 0 }
  0x1c   : > { %s5949_s30 = scalar_select %p4474_p12, 1, 0 }
  0x1d   : > { %s4485_s8 = sshll.u32 %s4479_s6, 5  ;;  %p4487_p13 = pnand %p4051_p10, %p47_p5 }
  0x1e   : > { %5950 = sst [smem:[#allocation21_spill]] %s5949_s30  ;;  %s224_s10 = sand.u32 1, %s4375_s21  }
  0x1f   : > { %s5952_s1 = sld [smem:[#allocation27_spill]]  ;;  %s228_s14 = scalar_lea.vmem [#allocation5], %s4485_s8 }
  0x20   : > { %s236_s15 = sshll.u32 %s228_s14, 4  ;;  %s4500_s16 = scalar_lea.sflag [#allocation6], %s224_s10  ;;  %s237_s15 = int_to_ptr.vmem [resolvable:$true] %s236_s15 }
  0x21   : > { %p4506_p2 = pneg %p4487_p13 }
  0x25   : > { %s4496_s13 = scalar_lea.hbm %s5952_s1, %s4482_s7  ;;  %s4166_s11 = scalar_lea.hbm %s5952_s1, 1024 }
  0x26   : > { %s4161_s17 = scalar_lea.hbm %s4496_s13, 512  ;;  %p4167_p5 = scmp.lt.s32.totalorder %s4496_s13, %s5952_s1 }
  0x27   : > { %p4162_p1 = scmp.ne.s32.totalorder %s4496_s13, %s4161_s17  ;;  %p4168_p7 = scmp.lt.s32.totalorder %s4166_s11, %s4161_s17 }
  0x29   : > { %p4164_p3 = pnand %p4506_p2, %p4162_p1  ;;  %p4169_p8 = por %p4168_p7, %p4167_p5 }
  0x2b   : > { %p4165_p4 = pneg %p4164_p3 }
  0x2d   : > { %p4170_p10 = pnand %p4169_p8, %p4165_p4 }
  0x2f   : > { %4173 = shalt.err (!%p4170_p10)
}
  0x30   : > { %s4174_s10 = scalar_lea.vmem %s237_s15, 512  ;;  %s4377_s27 = smov [#allocation5]  }
  0x31   : > { %p4175_p9 = scmp.ne.s32.totalorder %s237_s15, %s4174_s10  ;;  %s4179_s20 = sshll.u32 %s4377_s27, 4  ;;  %s4180_s20 = int_to_ptr.vmem [resolvable:$false] %s4179_s20 }
  0x32   : > { %s4181_s24 = scalar_lea.vmem %s4180_s20, 1024  ;;  %p4182_p1 = scmp.lt.s32.totalorder %s237_s15, %s4180_s20 }
  0x33   : > { %p4177_p0 = pnand %p4175_p9, %p4506_p2  ;;  %p4183_p3 = scmp.lt.s32.totalorder %s4181_s24, %s4174_s10 }
  0x35   : > { %p4178_p12 = pneg %p4177_p0  ;;  %p4184_p11 = por %p4183_p3, %p4182_p1 }
  0x37   : > { %p4185_p6 = pnand %p4184_p11, %p4178_p12 }
  0x39   : > { %4188 = shalt.err (!%p4185_p6)
}
  0x3a   : > { %4037 = dma.hbm_to_vmem [thread:$0]  (!%p4487_p13), %s4496_s13, 512, %s237_s15, %s4500_s16  }
  0x3b   : > { %p279_p9 = scmp.lt.s32.totalorder %s4375_s21, 3  ;;  %s5954_s0 = sld [smem:[#allocation26_spill]] }
  0x3c   : > { %p5955_p0 = scmp.ge.s32.totalorder %s4375_s21, 1  ;;  %s209_s25 = scalar_lea.vmem [#allocation2], %s4485_s8 }
  0x3d   : > { %s217_s26 = sshll.u32 %s209_s25, 4  ;;  %s206_s11 = scalar_lea.sflag [#allocation3], %s4479_s6  ;;  %s218_s26 = int_to_ptr.vmem [resolvable:$true] %s217_s26 }
  0x3e   : > { %p4534_p6 = pnand %p5955_p0, %p279_p9 }
  0x40   : > { %s5956_s24 = scalar_select %p4534_p6, 1, 0 }
  0x41   : > { %s4530_s20 = scalar_lea.hbm %s5954_s0, %s4482_s7  ;;  %s4194_s14 = scalar_lea.hbm %s5954_s0, 1024 }
  0x42   : > { %s4189_s12 = scalar_lea.hbm %s4530_s20, 512  ;;  %p4195_p5 = scmp.lt.s32.totalorder %s4530_s20, %s5954_s0 }
  0x43   : > { %p4190_p11 = scmp.ne.s32.totalorder %s4530_s20, %s4189_s12  ;;  %p4196_p7 = scmp.lt.s32.totalorder %s4194_s14, %s4189_s12 }
  0x45   : > { %p4192_p12 = pnand %p4190_p11, %p4506_p2  ;;  %p4197_p8 = por %p4196_p7, %p4195_p5 }
  0x47   : > { %p4193_p4 = pneg %p4192_p12 }
  0x49   : > { %p4198_p10 = pnand %p4197_p8, %p4193_p4 }
  0x4b   : > { %4201 = shalt.err (!%p4198_p10)
}
  0x4c   : > { %s4202_s17 = scalar_lea.vmem %s218_s26, 512  ;;  %s4378_s25 = smov [#allocation2]  }
  0x4d   : > { %p4203_p1 = scmp.ne.s32.totalorder %s218_s26, %s4202_s17  ;;  %s4207_s1 = sshll.u32 %s4378_s25, 4  ;;  %s4208_s1 = int_to_ptr.vmem [resolvable:$false] %s4207_s1 }
  0x4e   : > { %s4209_s30 = scalar_lea.vmem %s4208_s1, 1024  ;;  %p4210_p0 = scmp.lt.s32.totalorder %s218_s26, %s4208_s1 }
  0x4f   : > { %p4205_p3 = pnand %p4203_p1, %p4506_p2  ;;  %p4211_p11 = scmp.lt.s32.totalorder %s4209_s30, %s4202_s17 }
  0x51   : > { %p4206_p9 = pneg %p4205_p3  ;;  %p4212_p12 = por %p4211_p11, %p4210_p0 }
  0x53   : > { %p4213_p6 = pnand %p4212_p12, %p4206_p9 }
  0x55   : > { %4216 = shalt.err (!%p4213_p6)
}
  0x56   : > { %4034 = dma.hbm_to_vmem [thread:$0]  (!%p4487_p13), %s4530_s20, 512, %s218_s26, %s206_s11  }
  0x57   : > { %s253_s15 = scalar_lea.hbm %s5924_s2, %s4482_s7  ;;  %s247_s14 = scalar_lea.vmem [#allocation7], %s4485_s8 }
  0x58   : > { %s255_s10 = sshll.u32 %s247_s14, 4  ;;  %s4217_s27 = scalar_lea.hbm %s253_s15, 512  ;;  %s256_s10 = int_to_ptr.vmem [resolvable:$true] %s255_s10 }
  0x59   : > { %p4218_p4 = scmp.ne.s32.totalorder %s253_s15, %s4217_s27  ;;  %s4222_s17 = scalar_lea.hbm %s5924_s2, 1024 }
  0x5a   : > { %p4223_p6 = scmp.lt.s32.totalorder %s253_s15, %s5924_s2  ;;  %p4224_p8 = scmp.lt.s32.totalorder %s4222_s17, %s4217_s27 }
  0x5b   : > { %p4220_p5 = pnand %p4218_p4, %p4506_p2 }
  0x5c   : > { %p4225_p10 = por %p4224_p8, %p4223_p6 }
  0x5d   : > { %p4221_p7 = pneg %p4220_p5 }
  0x5f   : > { %p4226_p1 = pnand %p4225_p10, %p4221_p7 }
  0x61   : > { %4229 = shalt.err (!%p4226_p1)
}
  0x62   : > { %s4230_s7 = scalar_lea.vmem %s256_s10, 512  ;;  %s4379_s8 = smov [#allocation7]  }
  0x63   : > { %p4231_p3 = scmp.ne.s32.totalorder %s256_s10, %s4230_s7  ;;  %s4235_s20 = sshll.u32 %s4379_s8, 4  ;;  %s4236_s20 = int_to_ptr.vmem [resolvable:$false] %s4235_s20 }
  0x64   : > { %s4237_s26 = scalar_lea.vmem %s4236_s20, 1024  ;;  %p4238_p11 = scmp.lt.s32.totalorder %s256_s10, %s4236_s20 }
  0x65   : > { %p4233_p9 = pnand %p4231_p3, %p4506_p2  ;;  %p4239_p12 = scmp.lt.s32.totalorder %s4237_s26, %s4230_s7 }
  0x67   : > { %p4234_p0 = pneg %p4233_p9  ;;  %p4240_p4 = por %p4239_p12, %p4238_p11 }
  0x69   : > { %p4241_p5 = pnand %p4240_p4, %p4234_p0 }
  0x6b   : > { %4244 = shalt.err (!%p4241_p5)
}
  0x6c   : > { %4040 = dma.hbm_to_vmem [thread:$0]  (!%p4487_p13), %s253_s15, 512, %s256_s10, %s4500_s16  }
  0x6d   : > { %s3803_s0 = sshll.u32 %s4479_s6, 4  ;;  %s3864_s11 = sshll.u32 %s4375_s21, 8 }
  0x6e   : > { %s4579_s14 = scalar_lea.hbm %s5925_s3, %s3864_s11  ;;  %s266_s27 = scalar_lea.vmem [#allocation8], %s3803_s0 }
  0x6f   : > { %s274_s1 = sshll.u32 %s266_s27, 4  ;;  %s263_s30 = scalar_lea.sflag [#allocation9], %s4479_s6  ;;  %s275_s1 = int_to_ptr.vmem [resolvable:$true] %s274_s1 }
  0x70   : > { %s4245_s17 = scalar_lea.hbm %s4579_s14, 256  ;;  %s4250_s10 = scalar_lea.hbm %s5925_s3, 512 }
  0x71   : > { %p4246_p7 = scmp.ne.s32.totalorder %s4579_s14, %s4245_s17  ;;  %p4251_p10 = scmp.lt.s32.totalorder %s4579_s14, %s5925_s3 }
  0x72   : > { %p4252_p1 = scmp.lt.s32.totalorder %s4250_s10, %s4245_s17 }
  0x73   : > { %p4248_p6 = pnand %p4246_p7, %p4506_p2 }
  0x74   : > { %p4253_p3 = por %p4252_p1, %p4251_p10 }
  0x75   : > { %p4249_p8 = pneg %p4248_p6 }
  0x77   : > { %p4254_p9 = pnand %p4253_p3, %p4249_p8 }
  0x79   : > { %4257 = shalt.err (!%p4254_p9)
}
  0x7a   : > { %s4258_s8 = scalar_lea.vmem %s275_s1, 256  ;;  %s4380_s6 = smov [#allocation8]  }
  0x7b   : > { %p4259_p0 = scmp.ne.s32.totalorder %s275_s1, %s4258_s8  ;;  %s4263_s20 = sshll.u32 %s4380_s6, 4  ;;  %s4264_s20 = int_to_ptr.vmem [resolvable:$false] %s4263_s20 }
  0x7c   : > { %s4265_s26 = scalar_lea.vmem %s4264_s20, 512  ;;  %p4266_p4 = scmp.lt.s32.totalorder %s275_s1, %s4264_s20 }
  0x7d   : > { %p4261_p11 = pnand %p4259_p0, %p4506_p2  ;;  %p4267_p5 = scmp.lt.s32.totalorder %s4265_s26, %s4258_s8 }
  0x7f   : > { %p4262_p12 = pneg %p4261_p11  ;;  %p4268_p7 = por %p4267_p5, %p4266_p4 }
  0x81   : > { %p4269_p6 = pnand %p4268_p7, %p4262_p12 }
  0x83   : > { %4272 = shalt.err (!%p4269_p6)
}
  0x84   : > { %4043 = dma.hbm_to_vmem [thread:$0]  (!%p4487_p13), %s4579_s14, 256, %s275_s1, %s263_s30  }
  0x85   : > { %p5957_p8 = scmp.ne.s32.totalorder %s5956_s24, 0 }
  0x87   : > { %283 = sbr.rel (%p5957_p8) target bundleno = 1282 (0x502), region = 36 }
  0x8c   : > { %s4601_s23 = sand.u32 1, %s4367_s19   ;;  %p5958_p2 = scmp.ne.s32.totalorder %s5947_s28, 0 }
  0x8d   : > { %s4604_s0 = sshll.u32 %s4601_s23, 5  ;;  %s286_s11 = scalar_lea.sflag [#allocation3], %s4601_s23 }
  0x8e   : > { %s4608_s12 = scalar_lea.vmem [#allocation2], %s4604_s0 }
  0x8f   : > { %4342 = dma.done.wait (%p5958_p2), %s286_s11, 512  }
  0x90   : > { %4344 = vsyncadd (%p5958_p2), %s286_s11, 4294966784  ;;  %s294_s9 = sand.u32 1, %s4445_s22   ;;  %s298_s13 = scalar_lea.vmem [#allocation5], %s4604_s0 }
  0x91   : > { %s295_s24 = scalar_lea.sflag [#allocation6], %s294_s9 }
  0x92   : > { %4346 = dma.done.wait (%p5958_p2), %s295_s24, 1024  }
  0x93   : > { %4348 = vsyncadd (%p5958_p2), %s295_s24, 4294966272  ;;  %s3810_s14 = sshll.u32 %s4601_s23, 4  ;;  %s4622_s27 = scalar_lea.vmem [#allocation7], %s4604_s0 }
  0x94   : > { %s313_s1 = scalar_lea.sflag [#allocation9], %s4601_s23  ;;  %s4627_s30 = scalar_lea.vmem [#allocation8], %s3810_s14 }
  0x95   : > { %4350 = dma.done.wait (%p5958_p2), %s313_s1, 256  }
  0x96   : > { %4352 = vsyncadd (%p5958_p2), %s313_s1, 4294967040  ;;  %v4633_v0 = vld [vmem:[%s298_s13 + $0x10] sm:$0xff]  ;;  %s4381_s17 = smov 32   ;;  %s4382_s16 = smov 96   ;;  %v4639_v1 = vld [vmem:[%s298_s13 + $0x18] sm:$0xff]  ;;  %v413_v15 = vlaneseq  ;;  %vm1630_vm0 = vcmask 261120  }
  0x97   : > { %711 = vrot.lane.b32.xlu1 %v4633_v0, %s4381_s17  ;;  %705 = vrot.lane.b32.xlu0 %v4633_v0, %s4382_s16  ;;  %s4383_s15 = smov 64   ;;  %v4649_v2 = vld [vmem:[%s298_s13] sm:$0xff]  ;;  %v4655_v3 = vld [vmem:[%s298_s13 + $0x8] sm:$0xff]  ;;  %s4384_s28 = smov 112   ;;  %v4388_v13 = vmov 1983009808  }
  0x98   : > { %v4666_v4 = vld [vmem:[%s4608_s12] sm:$0xff]  ;;  %v4673_v5 = vld [vmem:[%s4608_s12 + $0x8] sm:$0xff]  ;;  %v4684_v6 = vld [vmem:[%s4608_s12 + $0x10] sm:$0xff]  ;;  %s4385_s10 = smov 80   ;;  %s4386_s25 = smov 48   ;;  %v411_v14 = vunpack.c.l.s4 %v4388_v13  ;;  %v414_v19 = vshrl.u32 %v413_v15, 7 }
  0x99   : > { %v4691_v7 = vld [vmem:[%s4608_s12 + $0x18] sm:$0xff]  ;;  %v4702_v8 = vld [vmem:[%s4627_s30] sm:$0xff]  ;;  %s4387_s7 = smov 16   ;;  %v4743_v11 = vld [vmem:[%s4622_s27 + $0x8] sm:$0xff]  ;;  %v4389_v22 = vmov 1934713408  }
  0x9a   : > { %v4717_v9 = vld [vmem:[%s4627_s30 + $0x8] sm:$0xff]  ;;  %v4736_v10 = vld [vmem:[%s4622_s27] sm:$0xff]  ;;  %v998_v12 = vld [vmem:[%s4622_s27 + $0x10] sm:$0xff]  ;;  %v412_v18 = vunpack.c.0.s8 %v411_v14  ;;  %v475_v23 = vunpack.c.l.s4 %v4389_v22  ;;  %vm2359_vm1 = vcmask 130048   ;;  %vm4391_vm2 = vmmov 0   ;;  %s5794_s8 = scalar_lea.vmem [#allocation10], %s4604_s0 }
  0x9b   : > { %715 = vrot.lane.b32.xlu1 %v4639_v1, %s4382_s16  ;;  %708 = vrot.lane.b32.xlu0 %v4633_v0, %s4383_s15  ;;  %vm3225_vm3 = vcmask 523264   ;;  %vm3227_vm4 = vcmask 785408   ;;  %vm3572_vm5 = vcmask 392192   ;;  %s3865_s6 = sshll.u32 %s4445_s22, 9  ;;  %s3609_s20 = sshll.u32 %s5794_s8, 4  ;;  %vm3575_vm6 = vcmask 654336   ;;  %s5827_s20 = int_to_ptr.vmem [resolvable:$true] %s3609_s20 }
  0x9c   : > { %v4766_v25 = vsub.s32 %v412_v18, %v414_v19  ;;  %v476_v30 = vunpack.c.0.s8 %v475_v23  ;;  %s5825_s11 = scalar_lea.hbm %s5926_s4, %s3865_s6  ;;  %s5834_s12 = scalar_lea.vmem [#allocation11], %s3810_s14  ;;  %vm3578_vm7 = vcmask 916480  }
  0x9d   : > { %s3623_s9 = sshll.u32 %s5834_s12, 4  ;;  %s3866_s24 = sshll.u32 %s4445_s22, 8  ;;  %s5877_s9 = int_to_ptr.vmem [resolvable:$true] %s3623_s9 }
  0x9e   : > { %v4786_v38 = vsub.s32 %v476_v30, %v414_v19  ;;  %s3590_s13 = scalar_lea.sflag [#allocation4], %s4601_s23  ;;  %p5979_p10 = scmp.ne.s32.totalorder %s5948_s29, 0 }
  0x9f   : > { %721 = vrot.lane.b32.xlu1 %v4639_v1, %s4381_s17  ;;  %718 = vrot.lane.b32.xlu0 %v4639_v1, %s4383_s15  ;;  %s4392_s14 = smov [#allocation10]  }
  0xa0   : > { %s4277_s1 = sshll.u32 %s4392_s14, 4  ;;  %s4278_s1 = int_to_ptr.vmem [resolvable:$false] %s4277_s1 }
  0xa1   : > { %s4279_s30 = scalar_lea.vmem %s4278_s1, 1024  ;;  %p4280_p9 = scmp.lt.s32.totalorder %s5827_s20, %s4278_s1 }
  0xa3   : > { %688 = vrot.lane.b32.xlu1 %v4649_v2, %s4383_s15  ;;  %685 = vrot.lane.b32.xlu0 %v4649_v2, %s4382_s16 }
  0xa7   : > { %695 = vrot.lane.b32.xlu1 %v4655_v3, %s4382_s16  ;;  %691 = vrot.lane.b32.xlu0 %v4649_v2, %s4381_s17 }
  0xab   : > { %701 = vrot.lane.b32.xlu1 %v4655_v3, %s4381_s17  ;;  %698 = vrot.lane.b32.xlu0 %v4655_v3, %s4383_s15 }
  0xaf   : > { %372 = vrot.lane.b32.xlu1 %v4666_v4, %s4383_s15  ;;  %369 = vrot.lane.b32.xlu0 %v4666_v4, %s4382_s16 }
  0xb3   : > { %379 = vrot.lane.b32.xlu1 %v4673_v5, %s4382_s16  ;;  %375 = vrot.lane.b32.xlu0 %v4666_v4, %s4381_s17 }
  0xb7   : > { %385 = vrot.lane.b32.xlu1 %v4673_v5, %s4381_s17  ;;  %382 = vrot.lane.b32.xlu0 %v4673_v5, %s4383_s15 }
  0xbb   : > { %392 = vrot.lane.b32.xlu1 %v4684_v6, %s4383_s15  ;;  %389 = vrot.lane.b32.xlu0 %v4684_v6, %s4382_s16 }
  0xbf   : > { %399 = vrot.lane.b32.xlu1 %v4691_v7, %s4382_s16  ;;  %395 = vrot.lane.b32.xlu0 %v4684_v6, %s4381_s17 }
  0xc3   : > { %405 = vrot.lane.b32.xlu1 %v4691_v7, %s4381_s17  ;;  %402 = vrot.lane.b32.xlu0 %v4691_v7, %s4383_s15 }
  0xc7   : > { %1318 = vrot.lane.b32.xlu1 %v4702_v8, %s4382_s16  ;;  %1315 = vrot.lane.b32.xlu0 %v4702_v8, %s4384_s28 }
  0xcb   : > { %1324 = vrot.lane.b32.xlu1 %v4702_v8, %s4383_s15  ;;  %1321 = vrot.lane.b32.xlu0 %v4702_v8, %s4385_s10 }
  0xcf   : > { %1330 = vrot.lane.b32.xlu1 %v4702_v8, %s4381_s17  ;;  %1327 = vrot.lane.b32.xlu0 %v4702_v8, %s4386_s25 }
  0xd3   : > { %1337 = vrot.lane.b32.xlu1 %v4717_v9, %s4384_s28  ;;  %1333 = vrot.lane.b32.xlu0 %v4702_v8, %s4387_s7 }
  0xd7   : > { %1343 = vrot.lane.b32.xlu1 %v4717_v9, %s4385_s10  ;;  %1340 = vrot.lane.b32.xlu0 %v4717_v9, %s4382_s16 }
  0xdb   : > { %1349 = vrot.lane.b32.xlu1 %v4717_v9, %s4386_s25  ;;  %1346 = vrot.lane.b32.xlu0 %v4717_v9, %s4383_s15 }
  0xdf   : > { %1355 = vrot.lane.b32.xlu1 %v4717_v9, %s4387_s7  ;;  %1352 = vrot.lane.b32.xlu0 %v4717_v9, %s4381_s17 }
  0xe3   : > { %1001 = vrot.lane.b32.xlu1 %v4736_v10, %s4382_s16  ;;  %1004 = vrot.lane.b32.xlu0 %v4736_v10, %s4383_s15 }
  0xe7   : > { %1007 = vrot.lane.b32.xlu1 %v4736_v10, %s4381_s17  ;;  %1014 = vrot.lane.b32.xlu0 %v4743_v11, %s4383_s15 }
  0xeb   : > { %1011 = vrot.lane.b32.xlu1 %v4743_v11, %s4382_s16  ;;  %1021 = vrot.lane.b32.xlu0 %v998_v12, %s4382_s16 }
  0xef   : > { %1017 = vrot.lane.b32.xlu1 %v4743_v11, %s4381_s17 }
  0xf3   : > { %1024 = vrot.lane.b32.xlu1 %v998_v12, %s4383_s15 }
 0x109   : > { %v4756_v16 = vpop.permute.xlu1 %711  ;;  %v4758_v17 = vpop.permute.xlu0 %705 }
 0x10a   : > { %v876_v26 = vcombine.low %v4758_v17, %v4756_v16 }
 0x10c   : > { %v884_v32 = vrot.slane %v876_v26, %v4766_v25 }
 0x10d   : > { %v4760_v20 = vpop.permute.xlu1 %715  ;;  %v4762_v21 = vpop.permute.xlu0 %708 }
 0x10e   : > { %v860_v24 = vcombine.low %v4633_v0, %v4762_v21 }
 0x110   : > { %v868_v27 = vrot.slane %v860_v24, %v4766_v25 }
 0x111   : > { %v4771_v28 = vpop.permute.xlu1 %721  ;;  %v4773_v29 = vpop.permute.xlu0 %718 }
 0x112   : > { %v908_v31 = vcombine.low %v4760_v20, %v4771_v28  ;;  %v892_v33 = vcombine.low %v4639_v1, %v4773_v29  ;;  %v924_v39 = vcombine.low %v868_v27, %v884_v32  ;;  %v925_v61 = vcombine.high %v868_v27, %v884_v32 }
 0x114   : > { %v916_v34 = vrot.slane %v908_v31, %v4766_v25  ;;  %v900_v35 = vrot.slane %v892_v33, %v4766_v25  ;;  %v932_v43 = vrot.slane %v924_v39, %v4786_v38  ;;  %v939_v24 = vrot.slane %v925_v61, %v4786_v38 }
 0x115   : > { %v4782_v36 = vpop.permute.xlu1 %688  ;;  %v4784_v37 = vpop.permute.xlu0 %685 }
 0x116   : > { %v956_v40 = vcombine.low %v900_v35, %v916_v34  ;;  %v724_v46 = vcombine.low %v4649_v2, %v4782_v36  ;;  %v957_v55 = vcombine.high %v900_v35, %v916_v34 }
 0x118   : > { %v964_v44 = vrot.slane %v956_v40, %v4786_v38  ;;  %v4809_v52 = vrot.slane %v724_v46, %v4766_v25  ;;  %v971_v15 = vrot.slane %v957_v55, %v4786_v38  ;;  %v861_v46 = vcombine.high %v4633_v0, %v4762_v21 }
 0x119   : > { %v4788_v41 = vpop.permute.xlu1 %695  ;;  %v4790_v42 = vpop.permute.xlu0 %691 }
 0x11a   : > { %v740_v45 = vcombine.low %v4784_v37, %v4790_v42  ;;  %v988_v47 = vcombine.low %v932_v43, %v964_v44  ;;  %v989_v48 = vcombine.high %v932_v43, %v964_v44  ;;  %v4851_v31 = vcombine.low %v939_v24, %v971_v15 }
 0x11b   : > { %v4855_v32 = vcombine.high %v939_v24, %v971_v15  ;;  %v4891_v0 = vrot.slane %v861_v46, %v4766_v25  ;;  %v741_v46 = vcombine.high %v4784_v37, %v4790_v42 }
 0x11c   : > { %v4799_v49 = vrot.slane %v740_v45, %v4766_v25  ;;  %3915 = vmatprep.subr.msk.mxu0 %vm1630_vm0, %v988_v47  ;;  %3922 = vmatprep.subr.msk.mxu1 %vm1630_vm0, %v989_v48 }
 0x11d   : > { %v4803_v50 = vpop.permute.xlu1 %701  ;;  %v4805_v51 = vpop.permute.xlu0 %698  ;;  %3916 = vmatpush3.xpose.msk.msra.mxu0 %vm1630_vm0, %v988_v47  ;;  %3923 = vmatpush3.xpose.msk.msra.mxu1 %vm1630_vm0, %v989_v48  ;;  %v877_v48 = vcombine.high %v4758_v17, %v4756_v16 }
 0x11e   : > { %v772_v53 = vcombine.low %v4788_v41, %v4803_v50  ;;  %v756_v54 = vcombine.low %v4655_v3, %v4805_v51  ;;  %v788_v56 = vcombine.low %v4809_v52, %v4799_v49  ;;  %v757_v24 = vcombine.high %v4655_v3, %v4805_v51 }
 0x120   : > { %v4819_v57 = vrot.slane %v772_v53, %v4766_v25  ;;  %v4822_v58 = vrot.slane %v756_v54, %v4766_v25  ;;  %v796_v14 = vrot.slane %v788_v56, %v4786_v38  ;;  %v909_v53 = vcombine.high %v4760_v20, %v4771_v28 }
 0x121   : > { %v4824_v59 = vpop.permute.xlu1 %372  ;;  %v4826_v60 = vpop.permute.xlu0 %369  ;;  %v893_v54 = vcombine.high %v4639_v1, %v4773_v29  ;;  %v4896_v20 = vrot.slane %v877_v48, %v4766_v25 }
 0x122   : > { %v820_v62 = vcombine.low %v4822_v58, %v4819_v57  ;;  %v408_v19 = vcombine.low %v4666_v4, %v4824_v59  ;;  %v4899_v1 = vrot.slane %v909_v53, %v4766_v25 }
 0x123   : > { %v4902_v28 = vrot.slane %v893_v54, %v4766_v25  ;;  %v940_v15 = vcombine.low %v4891_v0, %v4896_v20 }
 0x124   : > { %v828_v63 = vrot.slane %v820_v62, %v4786_v38  ;;  %v4858_v33 = vrot.slane %v408_v19, %v4766_v25  ;;  %v773_v19 = vcombine.high %v4788_v41, %v4803_v50  ;;  %v821_v41 = vcombine.high %v4822_v58, %v4819_v57 }
 0x125   : > { %v4831_v12 = vpop.permute.xlu1 %379  ;;  %v4833_v13 = vpop.permute.xlu0 %375  ;;  %v4943_v58 = vrot.slane %v757_v24, %v4766_v25 }
 0x126   : > { %v424_v18 = vcombine.low %v4826_v60, %v4833_v13  ;;  %v852_v22 = vcombine.low %v796_v14, %v828_v63  ;;  %v853_v23 = vcombine.high %v796_v14, %v828_v63  ;;  %v4939_v37 = vrot.slane %v773_v19, %v4766_v25 }
 0x128   : > { %v4843_v26 = vrot.slane %v424_v18, %v4766_v25  ;;  %3917 = vmatprep.subr.msk.mxu0 %vm1630_vm0, %v852_v22  ;;  %3924 = vmatprep.subr.msk.mxu1 %vm1630_vm0, %v853_v23  ;;  %v941_v18 = vcombine.high %v4891_v0, %v4896_v20  ;;  %v836_v53 = vcombine.low %v4943_v58, %v4939_v37 }
 0x129   : > { %v4847_v27 = vpop.permute.xlu1 %385  ;;  %v4849_v30 = vpop.permute.xlu0 %382  ;;  %3918 = vmatpush3.xpose.msk.msra.mxu0 %vm1630_vm0, %v852_v22  ;;  %3925 = vmatpush3.xpose.msk.msra.mxu1 %vm1630_vm0, %v853_v23  ;;  %v725_v23 = vcombine.high %v4649_v2, %v4782_v36 }
 0x12a   : > { %v456_v34 = vcombine.low %v4831_v12, %v4847_v27  ;;  %v440_v35 = vcombine.low %v4673_v5, %v4849_v30  ;;  %3929 = vmatprep.subr.msk.mxu0 %vm1630_vm0, %v4851_v31  ;;  %3936 = vmatprep.subr.msk.mxu1 %vm1630_vm0, %v4855_v32  ;;  %v472_v45 = vcombine.low %v4858_v33, %v4843_v26 }
 0x12b   : > { %v457_v2 = vcombine.high %v4831_v12, %v4847_v27  ;;  %v441_v3 = vcombine.high %v4673_v5, %v4849_v30  ;;  %v425_v12 = vcombine.high %v4826_v60, %v4833_v13  ;;  %v473_v5 = vcombine.high %v4858_v33, %v4843_v26 }
 0x12c   : > { %v464_v39 = vrot.slane %v456_v34, %v4766_v25  ;;  %v448_v40 = vrot.slane %v440_v35, %v4766_v25  ;;  %v480_v61 = vrot.slane %v472_v45, %v4786_v38  ;;  %v972_v45 = vcombine.low %v4902_v28, %v4899_v1 }
 0x12d   : > { %v4870_v43 = vpop.permute.xlu1 %392  ;;  %v4872_v44 = vpop.permute.xlu0 %389  ;;  %v4950_v30 = vrot.slane %v725_v23, %v4766_v25  ;;  %v4958_v48 = vrot.slane %v457_v2, %v4766_v25  ;;  %v4961_v60 = vrot.slane %v441_v3, %v4766_v25  ;;  %v4965_v26 = vrot.slane %v741_v46, %v4766_v25 }
 0x12e   : > { %v504_v47 = vcombine.low %v448_v40, %v464_v39  ;;  %v544_v29 = vcombine.low %v4684_v6, %v4870_v43  ;;  %v505_v42 = vcombine.high %v448_v40, %v464_v39  ;;  %v980_v39 = vrot.slane %v972_v45, %v4786_v38 }
 0x12f   : > { %v835_v40 = vrot.slane %v821_v41, %v4786_v38  ;;  %v4973_v54 = vrot.slane %v425_v12, %v4766_v25  ;;  %v520_v19 = vcombine.low %v4961_v60, %v4958_v48 }
 0x130   : > { %v512_v62 = vrot.slane %v504_v47, %v4786_v38  ;;  %v552_v50 = vrot.slane %v544_v29, %v4766_v25  ;;  %v789_v47 = vcombine.high %v4809_v52, %v4799_v49  ;;  %v409_v49 = vcombine.high %v4666_v4, %v4824_v59 }
 0x131   : > { %v4884_v55 = vpop.permute.xlu1 %399  ;;  %v4886_v56 = vpop.permute.xlu0 %395  ;;  %v948_v52 = vrot.slane %v940_v15, %v4786_v38  ;;  %v519_v33 = vrot.slane %v505_v42, %v4786_v38 }
 0x132   : > { %v560_v16 = vcombine.low %v4872_v44, %v4886_v56  ;;  %v536_v17 = vcombine.low %v480_v61, %v512_v62  ;;  %v537_v21 = vcombine.high %v480_v61, %v512_v62  ;;  %v803_v59 = vrot.slane %v789_v47, %v4786_v38 }
 0x133   : > { %v487_v61 = vrot.slane %v473_v5, %v4786_v38  ;;  %v4979_v15 = vrot.slane %v409_v49, %v4766_v25  ;;  %v992_v46 = vcombine.low %v948_v52, %v980_v39  ;;  %v993_v41 = vcombine.high %v948_v52, %v980_v39 }
 0x134   : > { %3919 = vmatprep.mubr.msk.f32.mxu0 %vm1630_vm0, %v536_v17  ;;  %3926 = vmatprep.mubr.msk.f32.mxu1 %vm1630_vm0, %v537_v21  ;;  %v4915_v22 = vrot.slane %v560_v16, %v4766_v25  ;;  %v854_v23 = vcombine.low %v803_v59, %v835_v40  ;;  %v855_v24 = vcombine.high %v803_v59, %v835_v40 }
 0x135   : > { %v406_v63 = vpop.permute.xlu1 %405  ;;  %v403_v14 = vpop.permute.xlu0 %402  ;;  %v489_v39 = vcombine.high %v4979_v15, %v4973_v54 }
 0x136   : > { %v592_v34 = vcombine.low %v4884_v55, %v406_v63  ;;  %v576_v35 = vcombine.low %v4691_v7, %v403_v14  ;;  %v608_v57 = vcombine.low %v552_v50, %v4915_v22  ;;  %v593_v62 = vcombine.high %v4884_v55, %v406_v63 }
 0x137   : > { %v577_v16 = vcombine.high %v4691_v7, %v403_v14  ;;  %v538_v7 = vcombine.low %v487_v61, %v519_v33  ;;  %v488_v55 = vcombine.low %v4979_v15, %v4973_v54  ;;  %v545_v63 = vcombine.high %v4684_v6, %v4870_v43 }
 0x138   : > { %v600_v36 = vrot.slane %v592_v34, %v4766_v25  ;;  %v584_v51 = vrot.slane %v576_v35, %v4766_v25  ;;  %v616_v4 = vrot.slane %v608_v57, %v4786_v38  ;;  %v561_v34 = vcombine.high %v4872_v44, %v4886_v56 }
 0x139   : > { %v609_v35 = vcombine.high %v552_v50, %v4915_v22  ;;  %v539_v44 = vcombine.high %v487_v61, %v519_v33  ;;  %v4997_v56 = vrot.slane %v593_v62, %v4766_v25  ;;  %v5000_v14 = vrot.slane %v577_v16, %v4766_v25  ;;  %v5075_v15 = vpop.permute.xlu1 %1318 }
 0x13a   : > { %v640_v27 = vcombine.low %v584_v51, %v600_v36  ;;  %v641_v17 = vcombine.high %v584_v51, %v600_v36  ;;  %v973_v6 = vcombine.high %v4902_v28, %v4899_v1  ;;  %v5013_v43 = vrot.slane %v561_v34, %v4766_v25 }
 0x13b   : > { %v623_v45 = vrot.slane %v609_v35, %v4786_v38  ;;  %v844_v50 = vrot.slane %v836_v53, %v4786_v38  ;;  %v496_v1 = vrot.slane %v488_v55, %v4786_v38  ;;  %v559_v28 = vrot.slane %v545_v63, %v4766_v25 }
 0x13c   : > { %v648_v13 = vrot.slane %v640_v27, %v4786_v38  ;;  %v655_v22 = vrot.slane %v641_v17, %v4786_v38  ;;  %v656_v2 = vcombine.low %v5000_v14, %v4997_v56  ;;  %v987_v42 = vrot.slane %v973_v6, %v4786_v38 }
 0x13d   : > { %v521_v57 = vcombine.high %v4961_v60, %v4958_v48  ;;  %v624_v12 = vcombine.low %v559_v28, %v5013_v43  ;;  %v837_v27 = vcombine.high %v4943_v58, %v4939_v37  ;;  %v955_v37 = vrot.slane %v941_v18, %v4786_v38 }
 0x13e   : > { %v672_v21 = vcombine.low %v616_v4, %v648_v13  ;;  %v673_v29 = vcombine.high %v616_v4, %v648_v13  ;;  %v674_v3 = vcombine.low %v623_v45, %v655_v22  ;;  %v675_v36 = vcombine.high %v623_v45, %v655_v22 }
 0x13f   : > { %v664_v40 = vrot.slane %v656_v2, %v4786_v38  ;;  %v805_v58 = vcombine.high %v4950_v30, %v4965_v26  ;;  %v535_v48 = vrot.slane %v521_v57, %v4786_v38  ;;  %v632_v60 = vrot.slane %v624_v12, %v4786_v38 }
 0x140   : > { %3920 = vmatmul.mubr.msk.f32.vlgmr.msra.gmra.mxu0 %vm1630_vm0, %v672_v21  ;;  %3927 = vmatmul.mubr.msk.f32.vlgmr.msra.gmra.mxu1 %vm1630_vm0, %v673_v29  ;;  %v994_v13 = vcombine.low %v955_v37, %v987_v42  ;;  %v851_v33 = vrot.slane %v837_v27, %v4786_v38  ;;  %v995_v4 = vcombine.high %v955_v37, %v987_v42 }
 0x141   : > { %3930 = vmatpush3.xpose.msk.msra.mxu0 %vm1630_vm0, %v4851_v31  ;;  %3937 = vmatpush3.xpose.msk.msra.mxu1 %vm1630_vm0, %v4855_v32  ;;  %v804_v31 = vcombine.low %v4950_v30, %v4965_v26  ;;  %v528_v32 = vrot.slane %v520_v19, %v4786_v38  ;;  %v503_v0 = vrot.slane %v489_v39, %v4786_v38  ;;  %v5077_v19 = vpop.permute.xlu0 %1315 }
 0x142   : > { %3931 = vmatprep.subr.msk.mxu0 %vm1630_vm0, %v854_v23  ;;  %3933 = vmatprep.mubr.msk.f32.mxu0 %vm1630_vm0, %v538_v7  ;;  %v657_v20 = vcombine.high %v5000_v14, %v4997_v56  ;;  %v676_v18 = vcombine.low %v632_v60, %v664_v40  ;;  %v677_v30 = vcombine.high %v632_v60, %v664_v40 }
 0x143   : > { %3938 = vmatprep.subr.msk.mxu1 %vm1630_vm0, %v855_v24  ;;  %3940 = vmatprep.mubr.msk.f32.mxu1 %vm1630_vm0, %v539_v44  ;;  %v540_v51 = vcombine.low %v496_v1, %v528_v32  ;;  %v812_v47 = vrot.slane %v804_v31, %v4786_v38  ;;  %v541_v5 = vcombine.high %v496_v1, %v528_v32 }
 0x144   : > { %v819_v26 = vrot.slane %v805_v58, %v4786_v38  ;;  %v625_v59 = vcombine.high %v559_v28, %v5013_v43  ;;  %v542_v53 = vcombine.low %v503_v0, %v535_v48  ;;  %v543_v54 = vcombine.high %v503_v0, %v535_v48 }
 0x145   : > { %3932 = vmatpush3.xpose.msk.msra.mxu0 %vm1630_vm0, %v854_v23  ;;  %3939 = vmatpush3.xpose.msk.msra.mxu1 %vm1630_vm0, %v855_v24  ;;  %v856_v49 = vcombine.low %v812_v47, %v844_v50  ;;  %v857_v52 = vcombine.high %v812_v47, %v844_v50  ;;  %v671_v62 = vrot.slane %v657_v20, %v4786_v38  ;;  %v5079_v23 = vpop.permute.xlu1 %1324  ;;  %v5081_v24 = vpop.permute.xlu0 %1321 }
 0x146   : > { %3943 = vmatprep.subr.msk.mxu0 %vm1630_vm0, %v992_v46  ;;  %3950 = vmatprep.subr.msk.mxu1 %vm1630_vm0, %v993_v41  ;;  %v858_v61 = vcombine.low %v819_v26, %v851_v33  ;;  %v859_v16 = vcombine.high %v819_v26, %v851_v33  ;;  %v639_v17 = vrot.slane %v625_v59, %v4786_v38 }
 0x148   : > { %3934 = vmatmul.mubr.msk.f32.vlgmr.msra.gmra.mxu0 %vm1630_vm0, %v674_v3  ;;  %3941 = vmatmul.mubr.msk.f32.vlgmr.msra.gmra.mxu1 %vm1630_vm0, %v675_v36  ;;  %v678_v21 = vcombine.low %v639_v17, %v671_v62  ;;  %v679_v29 = vcombine.high %v639_v17, %v671_v62 }
 0x149   : > { %3944 = vmatpush3.xpose.msk.msra.mxu0 %vm1630_vm0, %v992_v46  ;;  %3947 = vmatprep.mubr.msk.f32.mxu0 %vm1630_vm0, %v540_v51  ;;  %v5083_v34 = vpop.permute.xlu1 %1330  ;;  %v5085_v35 = vpop.permute.xlu0 %1327 }
 0x14a   : > { %3951 = vmatpush3.xpose.msk.msra.mxu1 %vm1630_vm0, %v993_v41  ;;  %3954 = vmatprep.mubr.msk.f32.mxu1 %vm1630_vm0, %v541_v5 }
 0x14b   : > { %3945 = vmatprep.subr.msk.mxu0 %vm1630_vm0, %v856_v49  ;;  %3952 = vmatprep.subr.msk.mxu1 %vm1630_vm0, %v857_v52 }
 0x14d   : > { %3946 = vmatpush3.xpose.msk.msra.mxu0 %vm1630_vm0, %v856_v49  ;;  %v5087_v7 = vpop.permute.xlu1 %1337  ;;  %v5089_v55 = vpop.permute.xlu0 %1333 }
 0x14e   : > { %3953 = vmatpush3.xpose.msk.msra.mxu1 %vm1630_vm0, %v857_v52  ;;  %3957 = vmatprep.subr.msk.mxu0 %vm1630_vm0, %v994_v13 }
 0x14f   : > { %3964 = vmatprep.subr.msk.mxu1 %vm1630_vm0, %v995_v4 }
 0x150   : > { %3948 = vmatmul.mubr.msk.f32.vlgmr.msra.gmra.mxu0 %vm1630_vm0, %v676_v18 }
 0x151   : > { %3955 = vmatmul.mubr.msk.f32.vlgmr.msra.gmra.mxu1 %vm1630_vm0, %v677_v30  ;;  %3958 = vmatpush3.xpose.msk.msra.mxu0 %vm1630_vm0, %v994_v13  ;;  %v5091_v63 = vpop.permute.xlu1 %1343  ;;  %v5093_v44 = vpop.permute.xlu0 %1340 }
 0x152   : > { %3961 = vmatprep.mubr.msk.f32.mxu0 %vm1630_vm0, %v542_v53  ;;  %3965 = vmatpush3.xpose.msk.msra.mxu1 %vm1630_vm0, %v995_v4 }
 0x153   : > { %3968 = vmatprep.mubr.msk.f32.mxu1 %vm1630_vm0, %v543_v54  ;;  %3959 = vmatprep.subr.msk.mxu0 %vm1630_vm0, %v858_v61 }
 0x154   : > { %3966 = vmatprep.subr.msk.mxu1 %vm1630_vm0, %v859_v16 }
 0x155   : > { %3960 = vmatpush3.xpose.msk.msra.mxu0 %vm1630_vm0, %v858_v61  ;;  %v5095_v56 = vpop.permute.xlu1 %1349  ;;  %v5097_v14 = vpop.permute.xlu0 %1346 }
 0x156   : > { %3967 = vmatpush3.xpose.msk.msra.mxu1 %vm1630_vm0, %v859_v16 }
 0x158   : > { %3962 = vmatmul.mubr.msk.f32.vlgmr.msra.gmra.mxu0 %vm1630_vm0, %v678_v21 }
 0x159   : > { %3969 = vmatmul.mubr.msk.f32.vlgmr.msra.gmra.mxu1 %vm1630_vm0, %v679_v29  ;;  %v5099_v22 = vpop.permute.xlu1 %1355  ;;  %v5101_v31 = vpop.permute.xlu0 %1352 }
 0x15d   : > { %v1002_v6 = vpop.permute.xlu1 %1001  ;;  %v1005_v43 = vpop.permute.xlu0 %1004 }
 0x15e   : > { %v1040_v41 = vcombine.low %v4736_v10, %v1005_v43  ;;  %v1041_v50 = vcombine.high %v4736_v10, %v1005_v43  ;;  %v1542_v43 = vcombine.low %v5095_v56, %v5099_v22 }
 0x160   : > { %v1048_v2 = vrot.slane %v1040_v41, %v4766_v25  ;;  %v1055_v3 = vrot.slane %v1041_v50, %v4766_v25  ;;  %v1374_v41 = vcombine.low %v5077_v19, %v5081_v24  ;;  %v1390_v50 = vcombine.low %v5079_v23, %v5083_v34 }
 0x161   : > { %v1008_v32 = vpop.permute.xlu1 %1007  ;;  %v1015_v51 = vpop.permute.xlu0 %1014 }
 0x162   : > { %v1056_v45 = vcombine.low %v1002_v6, %v1008_v32  ;;  %v1057_v46 = vcombine.high %v1002_v6, %v1008_v32  ;;  %v1072_v5 = vcombine.low %v4743_v11, %v1015_v51  ;;  %v1073_v27 = vcombine.high %v4743_v11, %v1015_v51 }
 0x163   : > { %v1510_v6 = vcombine.low %v5087_v7, %v5091_v63  ;;  %v1494_v32 = vcombine.low %v4717_v9, %v5093_v44 }
 0x164   : > { %v1064_v1 = vrot.slane %v1056_v45, %v4766_v25  ;;  %v1071_v28 = vrot.slane %v1057_v46, %v4766_v25  ;;  %v1080_v39 = vrot.slane %v1072_v5, %v4766_v25  ;;  %v1087_v40 = vrot.slane %v1073_v27, %v4766_v25 }
 0x165   : > { %v1012_v36 = vpop.permute.xlu1 %1011  ;;  %v1526_v45 = vcombine.low %v5097_v14, %v5101_v31  ;;  %v1358_v46 = vcombine.low %v4702_v8, %v5075_v15  ;;  %v1359_v27 = vcombine.high %v4702_v8, %v5075_v15 }
 0x166   : > { %v1104_v47 = vcombine.low %v1048_v2, %v1064_v1  ;;  %v1105_v42 = vcombine.high %v1048_v2, %v1064_v1  ;;  %v1120_v57 = vcombine.low %v1055_v3, %v1071_v28  ;;  %v1121_v12 = vcombine.high %v1055_v3, %v1071_v28 }
 0x167   : > { %v1406_v1 = vcombine.low %v5085_v35, %v5089_v55  ;;  %v1518_v28 = vrot.slane %v1510_v6, %v4766_v25  ;;  %v1502_v2 = vrot.slane %v1494_v32, %v4766_v25  ;;  %v1550_v3 = vrot.slane %v1542_v43, %v4766_v25 }
 0x168   : > { %v5116_v4 = vrot.slane %v1104_v47, %v4786_v38  ;;  %v5119_v11 = vrot.slane %v1105_v42, %v4786_v38  ;;  %v5128_v18 = vrot.slane %v1120_v57, %v4786_v38  ;;  %v5131_v30 = vrot.slane %v1121_v12, %v4786_v38 }
 0x169   : > { %v1018_v49 = vpop.permute.xlu1 %1017  ;;  %v1366_v51 = vrot.slane %v1358_v46, %v4766_v25  ;;  %v1382_v47 = vrot.slane %v1374_v41, %v4766_v25  ;;  %v1398_v42 = vrot.slane %v1390_v50, %v4766_v25  ;;  %v1414_v57 = vrot.slane %v1406_v1, %v4766_v25 }
 0x16a   : > { %v1088_v10 = vcombine.low %v1012_v36, %v1018_v49  ;;  %v1089_v52 = vcombine.high %v1012_v36, %v1018_v49  ;;  %5959 = vst [vmem:[#allocation22_spill] sm:$0xff] %v5128_v18  ;;  %5960 = vst [vmem:[#allocation23_spill] sm:$0xff] %v5131_v30  ;;  %v1534_v36 = vrot.slane %v1526_v45, %v4766_v25 }
 0x16b   : > { %v1558_v12 = vcombine.low %v1502_v2, %v1518_v28  ;;  %v1375_v49 = vcombine.high %v5077_v19, %v5081_v24  ;;  %v1407_v19 = vcombine.high %v5085_v35, %v5089_v55  ;;  %v1511_v24 = vcombine.high %v5087_v7, %v5091_v63 }
 0x16c   : > { %v1096_v37 = vrot.slane %v1088_v10, %v4766_v25  ;;  %v1103_v58 = vrot.slane %v1089_v52, %v4766_v25  ;;  %v1590_v5 = vcombine.low %v1534_v36, %v1550_v3  ;;  %v1422_v10 = vcombine.low %v1366_v51, %v1382_v47 }
 0x16d   : > { %v1454_v52 = vcombine.low %v1398_v42, %v1414_v57  ;;  %v1527_v46 = vcombine.high %v5097_v14, %v5101_v31  ;;  %v1591_v35 = vcombine.high %v1534_v36, %v1550_v3  ;;  %v1423_v50 = vcombine.high %v1366_v51, %v1382_v47 }
 0x16e   : > { %v1136_v48 = vcombine.low %v1080_v39, %v1096_v37  ;;  %v1137_v60 = vcombine.high %v1080_v39, %v1096_v37  ;;  %v1152_v13 = vcombine.low %v1087_v40, %v1103_v58  ;;  %v1153_v33 = vcombine.high %v1087_v40, %v1103_v58 }
 0x16f   : > { %v1566_v39 = vrot.slane %v1558_v12, %v4786_v38  ;;  %v1598_v40 = vrot.slane %v1590_v5, %v4786_v38  ;;  %v5186_v37 = vrot.slane %v1359_v27, %v4766_v25  ;;  %v5189_v58 = vrot.slane %v1375_v49, %v4766_v25 }
 0x170   : > { %v5122_v0 = vrot.slane %v1136_v48, %v4786_v38  ;;  %v5125_v20 = vrot.slane %v1137_v60, %v4786_v38  ;;  %v5134_v26 = vrot.slane %v1152_v13, %v4786_v38  ;;  %v5137_v59 = vrot.slane %v1153_v33, %v4786_v38 }
 0x171   : > { %v1391_v48 = vcombine.high %v5079_v23, %v5083_v34  ;;  %v1430_v8 = vrot.slane %v1422_v10, %v4786_v38  ;;  %v1462_v15 = vrot.slane %v1454_v52, %v4786_v38  ;;  %v1495_v60 = vcombine.high %v4717_v9, %v5093_v44 }
 0x172   : > { %5961 = vst [vmem:[#allocation24_spill] sm:$0xff] %v5134_v26  ;;  %5962 = vst [vmem:[#allocation25_spill] sm:$0xff] %v5137_v59  ;;  %v1559_v13 = vcombine.high %v1502_v2, %v1518_v28  ;;  %v1622_v32 = vcombine.low %v1566_v39, %v1598_v40  ;;  %v1623_v45 = vcombine.high %v1566_v39, %v1598_v40 }
 0x173   : > { %v1543_v34 = vcombine.high %v5095_v56, %v5099_v22  ;;  %v1486_v63 = vcombine.low %v1430_v8, %v1462_v15  ;;  %v1405_v1 = vrot.slane %v1391_v48, %v4766_v25  ;;  %v1421_v28 = vrot.slane %v1407_v19, %v4766_v25 }
 0x174   : > { %v1455_v2 = vcombine.high %v1398_v42, %v1414_v57  ;;  %v1525_v3 = vrot.slane %v1511_v24, %v4766_v25  ;;  %v1509_v36 = vrot.slane %v1495_v60, %v4766_v25  ;;  %v1541_v47 = vrot.slane %v1527_v46, %v4766_v25 }
 0x175   : > { %v1557_v51 = vrot.slane %v1543_v34, %v4766_v25  ;;  %v1487_v42 = vcombine.high %v1430_v8, %v1462_v15  ;;  %v1573_v57 = vrot.slane %v1559_v13, %v4786_v38  ;;  %v1605_v12 = vrot.slane %v1591_v35, %v4786_v38 }
 0x176   : > { %v1438_v5 = vcombine.low %v5186_v37, %v5189_v58  ;;  %v1470_v27 = vcombine.low %v1405_v1, %v1421_v28  ;;  %v1437_v52 = vrot.slane %v1423_v50, %v4786_v38  ;;  %v1469_v39 = vrot.slane %v1455_v2, %v4786_v38 }
 0x177   : > { %v1439_v15 = vcombine.high %v5186_v37, %v5189_v58  ;;  %v1471_v19 = vcombine.high %v1405_v1, %v1421_v28  ;;  %v1574_v13 = vcombine.low %v1509_v36, %v1525_v3  ;;  %v1575_v46 = vcombine.high %v1509_v36, %v1525_v3 }
 0x178   : > { %v1478_v34 = vrot.slane %v1470_v27, %v4786_v38  ;;  %v1625_v58 = vcombine.high %v1573_v57, %v1605_v12  ;;  %v1607_v50 = vcombine.high %v1541_v47, %v1557_v51  ;;  %v1489_v1 = vcombine.high %v1437_v52, %v1469_v39 }
 0x179   : > { %v1582_v28 = vrot.slane %v1574_v13, %v4786_v38 }
 0x200   : > { %v3921_v33 = vpop.f32.mrf.mxu0  ;;  %v3928_v6 = vpop.f32.mrf.mxu1 }
 0x201   : > { %v2328_v43 = vmul.f32 0.17677669, %v3921_v33  ;;  %v2330_v23 = vmul.f32 0.17677669, %v3928_v6  ;;  %v1606_v33 = vcombine.low %v1541_v47, %v1557_v51  ;;  %v1624_v6 = vcombine.low %v1573_v57, %v1605_v12 }
 0x202   : > { %v1709_v55 = vpop.f32.mrf.mxu0  ;;  %v1796_v41 = vpop.f32.mrf.mxu1 }
 0x203   : > { %v5205_v7 = vmul.f32 %v2328_v43, %v1622_v32  ;;  %v5207_v9 = vmul.f32 %v2330_v23, %v1623_v45  ;;  %v2327_v44 = vmul.f32 0.17677669, %v1709_v55  ;;  %v2329_v22 = vmul.f32 0.17677669, %v1796_v41 }
 0x204   : > { %v1488_v45 = vcombine.low %v1437_v52, %v1469_v39  ;;  %v1446_v23 = vrot.slane %v1438_v5, %v4786_v38  ;;  %v1614_v2 = vrot.slane %v1606_v33, %v4786_v38  ;;  %v1589_v5 = vrot.slane %v1575_v46, %v4786_v38 }
 0x205   : > { %v5211_v56 = vmul.f32 %v2327_v44, %v1486_v63  ;;  %v2369_v14 = vsel %vm2359_vm1, %v5207_v9, -inf  ;;  %v2363_v31 = vsel %vm2359_vm1, %v5205_v7, -inf  ;;  %v5227_v40 = vmul.f32 %v2329_v22, %v1487_v42 }
 0x206   : > { %2370 = vmax.xlane.f32.xlu0 %v2369_v14  ;;  %2364 = vmax.xlane.f32.xlu1 %v2363_v31  ;;  %v5242_v63 = vrot.slane %v1439_v15, %v4786_v38  ;;  %v5245_v44 = vrot.slane %v1471_v19, %v4786_v38  ;;  %v1490_v31 = vcombine.low %v1446_v23, %v1478_v34 }
 0x207   : > { %v2360_v8 = vsel %vm2359_vm1, %v5211_v56, -inf  ;;  %v2366_v37 = vsel %vm2359_vm1, %v5227_v40, -inf  ;;  %v1491_v3 = vcombine.high %v1446_v23, %v1478_v34  ;;  %v1627_v52 = vcombine.high %v1582_v28, %v1614_v2 }
 0x208   : > { %v3935_v49 = vpop.f32.mrf.mxu0  ;;  %v3942_v10 = vpop.f32.mrf.mxu1  ;;  %v1492_v27 = vcombine.low %v5242_v63, %v5245_v44 }
 0x209   : > { %v2332_v48 = vmul.f32 0.17677669, %v3935_v49  ;;  %v2334_v43 = vmul.f32 0.17677669, %v3942_v10  ;;  %v1493_v49 = vcombine.high %v5242_v63, %v5245_v44  ;;  %v1626_v10 = vcombine.low %v1582_v28, %v1614_v2 }
 0x20a   : > { %v1883_v24 = vpop.f32.mrf.mxu0  ;;  %v1970_v60 = vpop.f32.mrf.mxu1  ;;  %2361 = vmax.xlane.f32.xlu0 %v2360_v8  ;;  %v1621_v8 = vrot.slane %v1607_v50, %v4786_v38 }
 0x20b   : > { %v2331_v32 = vmul.f32 0.17677669, %v1883_v24  ;;  %v5235_v35 = vmul.f32 %v2332_v48, %v1624_v6  ;;  %v2333_v55 = vmul.f32 0.17677669, %v1970_v60  ;;  %v5249_v22 = vmul.f32 %v2334_v43, %v1625_v58 }
 0x20c   : > { %v1629_v50 = vcombine.high %v1589_v5, %v1621_v8 }
 0x20d   : > { %v5239_v41 = vmul.f32 %v2331_v32, %v1488_v45  ;;  %v5251_v36 = vmul.f32 %v2333_v55, %v1489_v1  ;;  %v2375_v51 = vsel %vm2359_vm1, %v5235_v35, -inf  ;;  %v3378_v15 = vcombine.low %v5205_v7, %v5235_v35 }
 0x20e   : > { %2367 = vmax.xlane.f32.xlu0 %v2366_v37  ;;  %v3394_v19 = vcombine.low %v5207_v9, %v5249_v22  ;;  %v2381_v60 = vsel %vm2359_vm1, %v5249_v22, -inf  ;;  %v3379_v43 = vcombine.high %v5205_v7, %v5235_v35  ;;  %v3395_v45 = vcombine.high %v5207_v9, %v5249_v22 }
 0x20f   : > { %v2372_v12 = vsel %vm2359_vm1, %v5239_v41, -inf  ;;  %v2378_v32 = vsel %vm2359_vm1, %v5251_v36, -inf  ;;  %v3242_v23 = vcombine.low %v5211_v56, %v5239_v41  ;;  %v3243_v34 = vcombine.high %v5211_v56, %v5239_v41 }
 0x210   : > { %v3949_v14 = vpop.f32.mrf.mxu0  ;;  %2373 = vmax.xlane.f32.xlu1 %v2372_v12  ;;  %v3258_v46 = vcombine.low %v5227_v40, %v5251_v36  ;;  %v1628_v55 = vcombine.low %v1589_v5, %v1621_v8  ;;  %v3259_v58 = vcombine.high %v5227_v40, %v5251_v36  ;;  %v5292_v1 = vrot.slane %v3378_v15, %v4766_v25 }
 0x211   : > { %v2336_v42 = vmul.f32 0.17677669, %v3949_v14  ;;  %v3956_v57 = vpop.f32.mrf.mxu1 }
 0x212   : > { %v2057_v47 = vpop.f32.mrf.mxu0  ;;  %2376 = vmax.xlane.f32.xlu0 %v2375_v51  ;;  %v2338_v24 = vmul.f32 0.17677669, %v3956_v57  ;;  %v5302_v51 = vrot.slane %v3242_v23, %v4766_v25 }
 0x213   : > { %v2335_v39 = vmul.f32 0.17677669, %v2057_v47  ;;  %v2144_v48 = vpop.f32.mrf.mxu1  ;;  %v5269_v13 = vmul.f32 %v2336_v42, %v1626_v10  ;;  %v5299_v42 = vrot.slane %v3394_v19, %v4766_v25  ;;  %v5305_v47 = vrot.slane %v3379_v43, %v4766_v25 }
 0x214   : > { %v2337_v6 = vmul.f32 0.17677669, %v2144_v48  ;;  %2379 = vmax.xlane.f32.xlu1 %v2378_v32  ;;  %v5289_v63 = vmul.f32 %v2338_v24, %v1627_v52  ;;  %v5316_v48 = vrot.slane %v3243_v34, %v4766_v25  ;;  %v5323_v24 = vrot.slane %v3259_v58, %v4766_v25 }
 0x215   : > { %v5271_v33 = vmul.f32 %v2335_v39, %v1490_v31  ;;  %v2387_v31 = vsel %vm2359_vm1, %v5269_v13, -inf  ;;  %v5313_v39 = vrot.slane %v3258_v46, %v4766_v25 }
 0x216   : > { %2382 = vmax.xlane.f32.xlu0 %v2381_v60  ;;  %v5294_v28 = vmul.f32 %v2337_v6, %v1491_v3  ;;  %v5308_v3 = vrot.slane %v3395_v45, %v4766_v25  ;;  %v2393_v19 = vsel %vm2359_vm1, %v5289_v63, -inf }
 0x217   : > { %v2384_v37 = vsel %vm2359_vm1, %v5271_v33, -inf }
 0x218   : > { %v3963_v44 = vpop.f32.mrf.mxu0  ;;  %2385 = vmax.xlane.f32.xlu1 %v2384_v37  ;;  %v2390_v43 = vsel %vm2359_vm1, %v5294_v28, -inf }
 0x219   : > { %v2340_v2 = vmul.f32 0.17677669, %v3963_v44  ;;  %v3970_v14 = vpop.f32.mrf.mxu1 }
 0x21a   : > { %v2342_v57 = vmul.f32 0.17677669, %v3970_v14  ;;  %v2231_v12 = vpop.f32.mrf.mxu0  ;;  %2388 = vmax.xlane.f32.xlu0 %v2387_v31 }
 0x21b   : > { %v5310_v5 = vmul.f32 %v2340_v2, %v1628_v55  ;;  %v2339_v10 = vmul.f32 0.17677669, %v2231_v12  ;;  %v2318_v52 = vpop.f32.mrf.mxu1 }
 0x21c   : > { %v5318_v8 = vmul.f32 %v2342_v57, %v1629_v50  ;;  %v2341_v15 = vmul.f32 0.17677669, %v2318_v52  ;;  %2391 = vmax.xlane.f32.xlu1 %v2390_v43  ;;  %v3459_v43 = vcombine.high %v5305_v47, %v5308_v3 }
 0x21d   : > { %v3410_v60 = vcombine.low %v5269_v13, %v5310_v5  ;;  %v3411_v6 = vcombine.high %v5269_v13, %v5310_v5  ;;  %v5329_v32 = vmul.f32 %v2339_v10, %v1492_v27  ;;  %v2399_v44 = vsel %vm2359_vm1, %v5310_v5, -inf }
 0x21e   : > { %v3426_v45 = vcombine.low %v5289_v63, %v5318_v8  ;;  %v3427_v23 = vcombine.high %v5289_v63, %v5318_v8  ;;  %v5337_v34 = vmul.f32 %v2341_v15, %v1493_v49  ;;  %2394 = vmax.xlane.f32.xlu0 %v2393_v19  ;;  %v3442_v19 = vcombine.low %v5292_v1, %v5299_v42 }
 0x21f   : > { %v3274_v46 = vcombine.low %v5271_v33, %v5329_v32  ;;  %v3275_v27 = vcombine.high %v5271_v33, %v5329_v32  ;;  %v2396_v55 = vsel %vm2359_vm1, %v5329_v32, -inf  ;;  %v5346_v37 = vrot.slane %v3410_v60, %v4766_v25 }
 0x220   : > { %v3290_v58 = vcombine.low %v5294_v28, %v5337_v34  ;;  %v3291_v49 = vcombine.high %v5294_v28, %v5337_v34  ;;  %v5355_v50 = vrot.slane %v3426_v45, %v4766_v25  ;;  %v5364_v31 = vrot.slane %v3411_v6, %v4766_v25  ;;  %2397 = vmax.xlane.f32.xlu1 %v2396_v55 }
 0x221   : > { %v5358_v2 = vrot.slane %v3274_v46, %v4766_v25  ;;  %v5361_v14 = vrot.slane %v3275_v27, %v4766_v25  ;;  %v5367_v57 = vrot.slane %v3427_v23, %v4766_v25  ;;  %v3306_v6 = vcombine.low %v5302_v51, %v5313_v39 }
 0x222   : > { %2400 = vmax.xlane.f32.xlu0 %v2399_v44  ;;  %v3474_v12 = vcombine.low %v5346_v37, %v5355_v50  ;;  %v5372_v10 = vrot.slane %v3290_v58, %v4766_v25  ;;  %v5375_v52 = vrot.slane %v3291_v49, %v4766_v25  ;;  %v2402_v45 = vsel %vm2359_vm1, %v5337_v34, -inf }
 0x223   : > { %v3491_v15 = vcombine.high %v5364_v31, %v5367_v57  ;;  %v2405_v23 = vsel %vm2359_vm1, %v5318_v8, -inf  ;;  %v3323_v46 = vcombine.high %v5316_v48, %v5323_v24  ;;  %v5408_v29 = vrot.slane %v3442_v19, %v4786_v38 }
 0x224   : > { %v3355_v60 = vcombine.high %v5361_v14, %v5375_v52  ;;  %v3338_v27 = vcombine.low %v5358_v2, %v5372_v10  ;;  %2403 = vmax.xlane.f32.xlu1 %v2402_v45  ;;  %v5396_v55 = vrot.slane %v3474_v12, %v4786_v38  ;;  %v5411_v21 = vrot.slane %v3306_v6, %v4786_v38  ;;  %v5428_v6 = vld [vmem:[%s4622_s27 + $0x18] sm:$0xff] }
 0x225   : > { %v5399_v58 = vrot.slane %v3491_v15, %v4786_v38  ;;  %v5414_v45 = vrot.slane %v3459_v43, %v4786_v38  ;;  %v5417_v12 = vrot.slane %v3323_v46, %v4786_v38  ;;  %v5433_v43 = vld [vmem:[%s4622_s27 + $0x10] sm:$0xff]  ;;  %v5439_v46 = vpop.permute.xlu0 %1021  ;;  %s4273_s27 = scalar_lea.vmem %s5827_s20, 512 }
 0x226   : > { %2406 = vmax.xlane.f32.xlu0 %v2405_v23  ;;  %v5402_v49 = vrot.slane %v3355_v60, %v4786_v38  ;;  %v5405_v44 = vrot.slane %v3338_v27, %v4786_v38  ;;  %v5441_v27 = vpop.permute.xlu1 %1024  ;;  %p4274_p13 = scmp.ne.s32.totalorder %s5827_s20, %s4273_s27  ;;  %p4281_p0 = scmp.lt.s32.totalorder %s4279_s30, %s4273_s27 }
 0x228   : > { %p4275_p1 = pnand %p4274_p13, %p5979_p10  ;;  %p4282_p11 = por %p4281_p0, %p4280_p9 }
 0x22a   : > { %p4276_p3 = pneg %p4275_p1 }
 0x22c   : > { %p4283_p12 = pnand %p4282_p11, %p4276_p3 }
 0x235   : > { %1031 = vrot.lane.b32.xlu1 %v5428_v6, %s4382_s16 }
 0x23c   : > { %1027 = vrot.lane.b32.xlu0 %v5433_v43, %s4381_s17 }
 0x240   : > { %1034 = vrot.lane.b32.xlu0 %v5428_v6, %s4383_s15 }
 0x28f   : > { %v2365_v15 = vpop.xlane.xlu1 %2364  ;;  %v2371_v60 = vpop.xlane.xlu0 %2370 }
 0x290   : > { %v2409_v19 = vsub.f32 %v5205_v7, %v2365_v15  ;;  %v2411_v23 = vsub.f32 %v5207_v9, %v2371_v60 }
 0x292   : > { %v2426_v17 = vmul.f32 1.442695, %v2409_v19  ;;  %v2430_v16 = vmul.f32 1.442695, %v2411_v23 }
 0x293   : > { %v2362_v62 = vpop.xlane.xlu0 %2361 }
 0x294   : > { %4096 = vpow2.f32 %v2426_v17  ;;  %v2408_v61 = vsub.f32 %v5211_v56, %v2362_v62 }
 0x295   : > { %4098 = vpow2.f32 %v2430_v16 }
 0x296   : > { %v2424_v54 = vmul.f32 1.442695, %v2408_v61 }
 0x297   : > { %v2368_v53 = vpop.xlane.xlu0 %2367 }
 0x298   : > { %4100 = vpow2.f32 %v2424_v54  ;;  %v2410_v59 = vsub.f32 %v5227_v40, %v2368_v53 }
 0x299   : > { %v2374_v26 = vpop.xlane.xlu1 %2373 }
 0x29a   : > { %v2428_v30 = vmul.f32 1.442695, %v2410_v59  ;;  %v2412_v7 = vsub.f32 %v5239_v41, %v2374_v26 }
 0x29b   : > { %v2377_v18 = vpop.xlane.xlu0 %2376 }
 0x29c   : > { %4102 = vpow2.f32 %v2428_v30  ;;  %v2413_v9 = vsub.f32 %v5235_v35, %v2377_v18  ;;  %v2432_v15 = vmul.f32 1.442695, %v2412_v7 }
 0x29d   : > { %v2380_v23 = vpop.xlane.xlu1 %2379 }
 0x29e   : > { %v2434_v60 = vmul.f32 1.442695, %v2413_v9  ;;  %4104 = vpow2.f32 %v2432_v15  ;;  %v2414_v62 = vsub.f32 %v5251_v36, %v2380_v23 }
 0x29f   : > { %v2383_v17 = vpop.xlane.xlu0 %2382 }
 0x2a0   : > { %v2415_v61 = vsub.f32 %v5249_v22, %v2383_v17  ;;  %4106 = vpow2.f32 %v2434_v60  ;;  %v2436_v59 = vmul.f32 1.442695, %v2414_v62 }
 0x2a1   : > { %v5451_v54 = vpop.eup %4096  ;;  %v2386_v18 = vpop.xlane.xlu1 %2385 }
 0x2a2   : > { %v2438_v53 = vmul.f32 1.442695, %v2415_v61  ;;  %v2459_v30 = vsel %vm2359_vm1, %v5451_v54, 0.0  ;;  %v5455_v26 = vpop.eup %4098  ;;  %4108 = vpow2.f32 %v2436_v59  ;;  %v2416_v41 = vsub.f32 %v5271_v33, %v2386_v18 }
 0x2a3   : > { %2460 = vadd.xlane.f32.xlu0 %v2459_v30  ;;  %v5457_v16 = vpop.xlane.xlu0 %2388  ;;  %v2465_v40 = vsel %vm2359_vm1, %v5455_v26, 0.0 }
 0x2a4   : > { %4110 = vpow2.f32 %v2438_v53  ;;  %v2440_v60 = vmul.f32 1.442695, %v2416_v41 }
 0x2a5   : > { %v5459_v56 = vpop.eup %4100  ;;  %v2392_v36 = vpop.xlane.xlu1 %2391 }
 0x2a6   : > { %v2456_v35 = vsel %vm2359_vm1, %v5459_v56, 0.0  ;;  %v2418_v23 = vsub.f32 %v5294_v28, %v2392_v36 }
 0x2a7   : > { %2466 = vadd.xlane.f32.xlu0 %v2465_v40  ;;  %2457 = vadd.xlane.f32.xlu1 %v2456_v35  ;;  %v2395_v22 = vpop.xlane.xlu0 %2394 }
 0x2a8   : > { %v2419_v19 = vsub.f32 %v5289_v63, %v2395_v22  ;;  %v2444_v63 = vmul.f32 1.442695, %v2418_v23 }
 0x2a9   : > { %v5467_v7 = vpop.eup %4102 }
 0x2aa   : > { %v2446_v9 = vmul.f32 1.442695, %v2419_v19  ;;  %v2462_v15 = vsel %vm2359_vm1, %v5467_v7, 0.0 }
 0x2ab   : > { %2463 = vadd.xlane.f32.xlu1 %v2462_v15  ;;  %v2401_v17 = vpop.xlane.xlu0 %2400  ;;  %v5472_v62 = vpop.eup %4104 }
 0x2ac   : > { %4112 = vpow2.f32 %v2446_v9  ;;  %v2468_v61 = vsel %vm2359_vm1, %v5472_v62, 0.0  ;;  %v2421_v59 = vsub.f32 %v5310_v5, %v2401_v17 }
 0x2ad   : > { %v5474_v33 = vpop.eup %4106  ;;  %4114 = vpow2.f32 %v2440_v60 }
 0x2ae   : > { %v2471_v53 = vsel %vm2359_vm1, %v5474_v33, 0.0  ;;  %4116 = vpow2.f32 %v2444_v63  ;;  %v2450_v35 = vmul.f32 1.442695, %v2421_v59  ;;  %v4390_v59 = vmov 0.0  }
 0x2af   : > { %2469 = vadd.xlane.f32.xlu1 %v2468_v61  ;;  %2472 = vadd.xlane.f32.xlu0 %v2471_v53  ;;  %v2407_v28 = vpop.xlane.xlu0 %2406  ;;  %v5481_v30 = vpop.eup %4108 }
 0x2b0   : > { %v2474_v40 = vsel %vm2359_vm1, %v5481_v30, 0.0  ;;  %v2423_v41 = vsub.f32 %v5318_v8, %v2407_v28  ;;  %4118 = vpow2.f32 %v2450_v35  ;;  %3971 = vmatprep.subr.bf16.mxu0 %v4390_v59  ;;  %3977 = vmatprep.subr.bf16.mxu1 %v4390_v59  ;;  %v2398_v53 = vpop.xlane.xlu1 %2397  ;;  %v2417_v28 = vsub.f32 %v5269_v13, %v5457_v16 }
 0x2b1   : > { %v5483_v18 = vpop.eup %4110  ;;  %3973 = vmatprep.mubr.msk.bf16.mxu0 %vm4391_vm2, %v4390_v59  ;;  %3979 = vmatprep.mubr.msk.bf16.mxu1 %vm4391_vm2, %v4390_v59  ;;  %v2420_v35 = vsub.f32 %v5329_v32, %v2398_v53  ;;  %v3339_v13 = vcombine.high %v5358_v2, %v5372_v10  ;;  %v3307_v16 = vcombine.high %v5302_v51, %v5313_v39 }
 0x2b2   : > { %v2477_v5 = vsel %vm2359_vm1, %v5483_v18, 0.0  ;;  %v2454_v22 = vmul.f32 1.442695, %v2423_v41  ;;  %v3354_v32 = vcombine.low %v5361_v14, %v5375_v52 }
 0x2b3   : > { %2475 = vadd.xlane.f32.xlu1 %v2474_v40  ;;  %2478 = vadd.xlane.f32.xlu0 %v2477_v5  ;;  %v2442_v40 = vmul.f32 1.442695, %v2417_v28  ;;  %v2448_v5 = vmul.f32 1.442695, %v2420_v35  ;;  %v3371_v35 = vcombine.high %v5411_v21, %v5405_v44 }
 0x2b4   : > { %4120 = vpow2.f32 %v2454_v22  ;;  %v2404_v41 = vpop.xlane.xlu1 %2403  ;;  %v3362_v51 = vrot.slane %v3354_v32, %v4786_v38 }
 0x2b5   : > { %4122 = vpow2.f32 %v2442_v40  ;;  %v2422_v22 = vsub.f32 %v5337_v34, %v2404_v41  ;;  %v3321_v34 = vrot.slane %v3307_v16, %v4786_v38  ;;  %v3376_v40 = vcombine.low %v5417_v12, %v5402_v49 }
 0x2b6   : > { %4124 = vpow2.f32 %v2448_v5  ;;  %v3475_v41 = vcombine.high %v5346_v37, %v5355_v50  ;;  %v3443_v5 = vcombine.high %v5292_v1, %v5299_v42  ;;  %v3458_v37 = vcombine.low %v5305_v47, %v5308_v3 }
 0x2b8   : > { %v3466_v1 = vrot.slane %v3458_v37, %v4786_v38  ;;  %v1032_v3 = vpop.permute.xlu1 %1031 }
 0x2b9   : > { %v5490_v36 = vpop.eup %4112 }
 0x2ba   : > { %v2489_v19 = vsel %vm2359_vm1, %v5490_v36, 0.0  ;;  %v5494_v9 = vpop.eup %4114 }
 0x2bb   : > { %2490 = vadd.xlane.f32.xlu0 %v2489_v19  ;;  %v2480_v15 = vsel %vm2359_vm1, %v5494_v9, 0.0  ;;  %v5498_v8 = vpop.eup %4116  ;;  %v2452_v19 = vmul.f32 1.442695, %v2422_v22 }
 0x2bc   : > { %v2486_v60 = vsel %vm2359_vm1, %v5498_v8, 0.0 }
 0x2bd   : > { %v5502_v23 = vpop.eup %4118  ;;  %4126 = vpow2.f32 %v2452_v19  ;;  %v3489_v19 = vrot.slane %v3475_v41, %v4786_v38 }
 0x2be   : > { %v2495_v17 = vsel %vm2359_vm1, %v5502_v23, 0.0 }
 0x2bf   : > { %2481 = vadd.xlane.f32.xlu0 %v2480_v15  ;;  %v3507_v15 = vcombine.high %v5408_v29, %v5396_v55 }
 0x2c1   : > { %v5508_v61 = vpop.eup %4120 }
 0x2c2   : > { %v2501_v63 = vsel %vm2359_vm1, %v5508_v61, 0.0  ;;  %v5535_v2 = vpop.eup %4122 }
 0x2c3   : > { %2487 = vadd.xlane.f32.xlu0 %v2486_v60  ;;  %v3353_v60 = vrot.slane %v3339_v13, %v4786_v38  ;;  %v5542_v14 = vpop.eup %4124  ;;  %v3457_v13 = vrot.slane %v3443_v5, %v4786_v38 }
 0x2c4   : > { %1037 = vrot.lane.b32.xlu1 %v5428_v6, %s4381_s17 }
 0x2c5   : > { %v3373_v10 = vcombine.high %v3321_v34, %v3353_v60  ;;  %v3372_v22 = vcombine.low %v3321_v34, %v3353_v60  ;;  %v3508_v16 = vcombine.low %v3457_v13, %v3489_v19  ;;  %v3509_v50 = vcombine.high %v3457_v13, %v3489_v19 }
 0x2c7   : > { %2496 = vadd.xlane.f32.xlu0 %v2495_v17  ;;  %v3322_v17 = vcombine.low %v5316_v48, %v5323_v24  ;;  %v2492_v48 = vsel %vm2359_vm1, %v5542_v14, 0.0 }
 0x2c9   : > { %v3330_v39 = vrot.slane %v3322_v17, %v4786_v38 }
 0x2ca   : > { %v5547_v24 = vpop.eup %4126 }
 0x2cb   : > { %2502 = vadd.xlane.f32.xlu0 %v2501_v63  ;;  %v2483_v63 = vsel %vm2359_vm1, %v5535_v2, 0.0  ;;  %v3374_v52 = vcombine.low %v3330_v39, %v3362_v51  ;;  %v3375_v53 = vcombine.high %v3330_v39, %v3362_v51  ;;  %v2498_v28 = vsel %vm2359_vm1, %v5547_v24, 0.0 }
 0x2e1   : > { %3543 = vrot.lane.b32.xlu0 %v3507_v15, %s4387_s7  ;;  %v3490_v15 = vcombine.low %v5364_v31, %v5367_v57  ;;  %v3512_v31 = vcombine.low %v5414_v45, %v5399_v58  ;;  %v1028_v57 = vpop.permute.xlu0 %1027 }
 0x2e3   : > { %v3498_v32 = vrot.slane %v3490_v15, %v4786_v38 }
 0x2e5   : > { %3523 = vrot.lane.b32.xlu0 %v3373_v10, %s4386_s25  ;;  %v3510_v42 = vcombine.low %v3466_v1, %v3498_v32  ;;  %v3511_v60 = vcombine.high %v3466_v1, %v3498_v32  ;;  %v1035_v47 = vpop.permute.xlu0 %1034 }
 0x2e6   : > { %v1208_v41 = vcombine.low %v5428_v6, %v1035_v47  ;;  %v1209_v5 = vcombine.high %v5428_v6, %v1035_v47 }
 0x2e8   : > { %2484 = vadd.xlane.f32.xlu1 %v2483_v63  ;;  %v1223_v6 = vrot.slane %v1209_v5, %v4766_v25 }
 0x2e9   : > { %3527 = vrot.lane.b32.xlu0 %v3374_v52, %s4383_s15  ;;  %v1192_v52 = vcombine.low %v5439_v46, %v1028_v57 }
 0x2ec   : > { %2493 = vadd.xlane.f32.xlu1 %v2492_v48  ;;  %v1176_v48 = vcombine.low %v5433_v43, %v5441_v27 }
 0x2ed   : > { %3531 = vrot.lane.b32.xlu0 %v3375_v53, %s4385_s10  ;;  %v1193_v53 = vcombine.high %v5439_v46, %v1028_v57 }
 0x2ee   : > { %v1184_v19 = vrot.slane %v1176_v48, %v4766_v25 }
 0x2ef   : > { %v1207_v13 = vrot.slane %v1193_v53, %v4766_v25 }
 0x2f0   : > { %2499 = vadd.xlane.f32.xlu1 %v2498_v28 }
 0x2f1   : > { %3535 = vrot.lane.b32.xlu0 %v3376_v40, %s4382_s16  ;;  %v1177_v40 = vcombine.high %v5433_v43, %v5441_v27 }
 0x2f3   : > { %v1191_v37 = vrot.slane %v1177_v40, %v4766_v25 }
 0x301   : > { %3515 = vrot.lane.b32.xlu1 %v3371_v35, %s4387_s7  ;;  %v1200_v35 = vrot.slane %v1192_v52, %v4766_v25 }
 0x303   : > { %v1240_v43 = vcombine.low %v1184_v19, %v1200_v35  ;;  %v1241_v27 = vcombine.high %v1184_v19, %v1200_v35 }
 0x305   : > { %3519 = vrot.lane.b32.xlu1 %v3372_v22, %s4381_s17 }
 0x309   : > { %3547 = vrot.lane.b32.xlu1 %v3508_v16, %s4381_s17 }
 0x30d   : > { %3551 = vrot.lane.b32.xlu1 %v3509_v50, %s4386_s25  ;;  %v1216_v50 = vrot.slane %v1208_v41, %v4766_v25 }
 0x311   : > { %3555 = vrot.lane.b32.xlu1 %v3510_v42, %s4383_s15  ;;  %v1256_v42 = vcombine.low %v1191_v37, %v1207_v13 }
 0x315   : > { %3559 = vrot.lane.b32.xlu1 %v3511_v60, %s4385_s10  ;;  %v1257_v60 = vcombine.high %v1191_v37, %v1207_v13 }
 0x317   : > { %v1271_v40 = vrot.slane %v1257_v60, %v4786_v38  ;;  %v5966_v60 = vcombine.high %v5119_v11, %v5125_v20 }
 0x319   : > { %3563 = vrot.lane.b32.xlu1 %v3512_v31, %s4382_s16 }
 0x32c   : > { %v2461_v34 = vpop.xlane.xlu0 %2460 }
 0x32d   : > { %4128 = vrcp.f32 %v2461_v34 }
 0x330   : > { %v2458_v17 = vpop.xlane.xlu1 %2457  ;;  %v2467_v51 = vpop.xlane.xlu0 %2466 }
 0x331   : > { %4130 = vrcp.f32 %v2458_v17 }
 0x334   : > { %v2464_v10 = vpop.xlane.xlu1 %2463 }
 0x335   : > { %4132 = vrcp.f32 %v2464_v10 }
 0x336   : > { %4134 = vrcp.f32 %v2467_v51  ;;  %v1248_v51 = vrot.slane %v1240_v43, %v4786_v38 }
 0x338   : > { %v2470_v39 = vpop.xlane.xlu1 %2469  ;;  %v2473_v63 = vpop.xlane.xlu0 %2472 }
 0x339   : > { %4136 = vrcp.f32 %v2470_v39 }
 0x33a   : > { %4138 = vrcp.f32 %v2473_v63  ;;  %v4129_v31 = vpop.eup %4128  ;;  %v1255_v63 = vrot.slane %v1241_v27, %v4786_v38 }
 0x33b   : > { %v2507_v41 = vmul.f32 %v4129_v31, %v5451_v54  ;;  %v5964_v54 = vcombine.high %v5116_v4, %v5122_v0 }
 0x33c   : > { %v2476_v28 = vpop.xlane.xlu1 %2475  ;;  %v2479_v22 = vpop.xlane.xlu0 %2478 }
 0x33d   : > { %4140 = vrcp.f32 %v2476_v28  ;;  %v1264_v28 = vrot.slane %v1256_v42, %v4786_v38 }
 0x33e   : > { %4142 = vrcp.f32 %v2479_v22  ;;  %v4131_v10 = vpop.eup %4130 }
 0x340   : > { %v1038_v16 = vpop.permute.xlu1 %1037 }
 0x341   : > { %v1224_v46 = vcombine.low %v1032_v3, %v1038_v16  ;;  %v1225_v15 = vcombine.high %v1032_v3, %v1038_v16 }
 0x342   : > { %v4133_v39 = vpop.eup %4132 }
 0x343   : > { %v1232_v32 = vrot.slane %v1224_v46, %v4766_v25  ;;  %v1239_v1 = vrot.slane %v1225_v15, %v4766_v25  ;;  %v4135_v5 = vpop.eup %4134  ;;  %v2505_v15 = vmul.f32 %v4131_v10, %v5459_v56  ;;  %v2509_v37 = vmul.f32 %v4133_v39, %v5467_v7 }
 0x344   : > { %v2491_v17 = vpop.xlane.xlu0 %2490  ;;  %v2511_v7 = vmul.f32 %v4135_v5, %v5455_v26 }
 0x345   : > { %v1272_v57 = vcombine.low %v1216_v50, %v1232_v32  ;;  %v1273_v47 = vcombine.high %v1216_v50, %v1232_v32  ;;  %v1288_v34 = vcombine.low %v1223_v6, %v1239_v1  ;;  %v1289_v3 = vcombine.high %v1223_v6, %v1239_v1 }
 0x346   : > { %v5963_v50 = vcombine.low %v5116_v4, %v5122_v0  ;;  %v5965_v1 = vcombine.low %v5119_v11, %v5125_v20  ;;  %v4137_v31 = vpop.eup %4136  ;;  %4144 = vrcp.f32 %v2491_v17  ;;  %v2536_v20 = vpack.c.bf16 %v2507_v41, %v2505_v15 }
 0x347   : > { %v1280_v52 = vrot.slane %v1272_v57, %v4786_v38  ;;  %v1287_v48 = vrot.slane %v1273_v47, %v4786_v38  ;;  %v1296_v53 = vrot.slane %v1288_v34, %v4786_v38  ;;  %v1303_v35 = vrot.slane %v1289_v3, %v4786_v38  ;;  %v5967_v57 = vld [vmem:[#allocation22_spill] sm:$0xff]  ;;  %v5968_v47 = vld [vmem:[#allocation24_spill] sm:$0xff]  ;;  %v4139_v10 = vpop.eup %4138 }
 0x348   : > { %v5603_v22 = vpop.xlane.xlu0 %2481  ;;  %v5969_v34 = vcombine.low %v5967_v57, %v5968_v47  ;;  %v5970_v4 = vcombine.high %v5967_v57, %v5968_v47  ;;  %v2537_v17 = vpack.c.bf16 %v2511_v7, %v2509_v37 }
 0x349   : > { %v1304_v19 = vcombine.low %v1248_v51, %v1280_v52  ;;  %v1305_v13 = vcombine.high %v1248_v51, %v1280_v52  ;;  %v1306_v16 = vcombine.low %v1255_v63, %v1287_v48  ;;  %v1307_v46 = vcombine.high %v1255_v63, %v1287_v48  ;;  %v5971_v52 = vld [vmem:[#allocation23_spill] sm:$0xff]  ;;  %v5972_v48 = vld [vmem:[#allocation25_spill] sm:$0xff] }
 0x34a   : > { %v1308_v43 = vcombine.low %v1264_v28, %v1296_v53  ;;  %v1309_v27 = vcombine.high %v1264_v28, %v1296_v53  ;;  %v1311_v39 = vcombine.high %v1271_v40, %v1303_v35  ;;  %v1310_v63 = vcombine.low %v1271_v40, %v1303_v35  ;;  %v4141_v11 = vpop.eup %4140 }
 0x34b   : > { %v2544_v6 = vpack.c.bf16 %v1304_v19, %v5963_v50  ;;  %v2545_v32 = vpack.c.bf16 %v1305_v13, %v5964_v54  ;;  %v2546_v42 = vpack.c.bf16 %v1306_v16, %v5965_v1  ;;  %v2547_v56 = vpack.c.bf16 %v1307_v46, %v5966_v60  ;;  %v4143_v26 = vpop.eup %4142 }
 0x34c   : > { %v2548_v3 = vpack.c.bf16 %v1308_v43, %v5969_v34  ;;  %v2549_v0 = vpack.c.bf16 %v1309_v27, %v5970_v4  ;;  %v2488_v51 = vpop.xlane.xlu0 %2487  ;;  %v5973_v53 = vcombine.high %v5971_v52, %v5972_v48  ;;  %v5974_v5 = vcombine.low %v5971_v52, %v5972_v48 }
 0x34d   : > { %3972 = vmatpush3.bf16.msra.mxu0 %v2544_v6  ;;  %3978 = vmatpush3.bf16.msra.mxu1 %v2545_v32  ;;  %4146 = vrcp.f32 %v2488_v51  ;;  %v2513_v40 = vmul.f32 %v4137_v31, %v5472_v62  ;;  %v2515_v35 = vmul.f32 %v4139_v10, %v5474_v33  ;;  %v2517_v41 = vmul.f32 %v4141_v11, %v5481_v30 }
 0x34e   : > { %3983 = vmatprep.subr.bf16.mxu0 %v4390_v59  ;;  %3989 = vmatprep.subr.bf16.mxu1 %v4390_v59  ;;  %v2551_v28 = vpack.c.bf16 %v1311_v39, %v5973_v53  ;;  %v2550_v19 = vpack.c.bf16 %v1310_v63, %v5974_v5  ;;  %v2519_v13 = vmul.f32 %v4143_v26, %v5483_v18  ;;  %4148 = vrcp.f32 %v5603_v22 }
 0x34f   : > { %v2538_v16 = vpack.c.bf16 %v2515_v35, %v2513_v40 }
 0x350   : > { %3974 = vmatmul.mubr.msk.bf16.vlgmr.msra.gmra.mxu0 %vm2359_vm1, %v2536_v20  ;;  %3980 = vmatmul.mubr.msk.bf16.vlgmr.msra.gmra.mxu1 %vm2359_vm1, %v2537_v17  ;;  %v2539_v46 = vpack.c.bf16 %v2519_v13, %v2517_v41  ;;  %v2497_v37 = vpop.xlane.xlu0 %2496 }
 0x351   : > { %3984 = vmatpush3.bf16.msra.mxu0 %v2546_v42  ;;  %3990 = vmatpush3.bf16.msra.mxu1 %v2547_v56 }
 0x352   : > { %3985 = vmatprep.mubr.msk.bf16.mxu0 %vm4391_vm2, %v4390_v59  ;;  %3991 = vmatprep.mubr.msk.bf16.mxu1 %vm4391_vm2, %v4390_v59 }
 0x353   : > { %3995 = vmatprep.subr.bf16.mxu0 %v4390_v59  ;;  %4001 = vmatprep.subr.bf16.mxu1 %v4390_v59  ;;  %v4145_v62 = vpop.eup %4144 }
 0x354   : > { %v2527_v18 = vmul.f32 %v4145_v62, %v5490_v36  ;;  %v2503_v27 = vpop.xlane.xlu0 %2502 }
 0x358   : > { %3986 = vmatmul.mubr.msk.bf16.vlgmr.msra.gmra.mxu0 %vm2359_vm1, %v2538_v16  ;;  %3992 = vmatmul.mubr.msk.bf16.vlgmr.msra.gmra.mxu1 %vm2359_vm1, %v2539_v46 }
 0x359   : > { %3996 = vmatpush3.bf16.msra.mxu0 %v2548_v3  ;;  %4002 = vmatpush3.bf16.msra.mxu1 %v2549_v0 }
 0x35a   : > { %4003 = vmatprep.mubr.msk.bf16.mxu1 %vm4391_vm2, %v4390_v59  ;;  %4013 = vmatprep.subr.bf16.mxu1 %v4390_v59  ;;  %v4147_v33 = vpop.eup %4146 }
 0x35b   : > { %3997 = vmatprep.mubr.msk.bf16.mxu0 %vm4391_vm2, %v4390_v59  ;;  %4007 = vmatprep.subr.bf16.mxu0 %v4390_v59  ;;  %v2525_v30 = vmul.f32 %v4147_v33, %v5498_v8  ;;  %v4149_v36 = vpop.eup %4148 }
 0x35c   : > { %v2521_v54 = vmul.f32 %v4149_v36, %v5494_v9 }
 0x35d   : > { %v2541_v15 = vpack.c.bf16 %v2527_v18, %v2525_v30 }
 0x360   : > { %4004 = vmatmul.mubr.msk.bf16.vlgmr.msra.gmra.mxu1 %vm2359_vm1, %v2541_v15 }
 0x361   : > { %4014 = vmatpush3.bf16.msra.mxu1 %v2551_v28  ;;  %4015 = vmatprep.mubr.msk.bf16.mxu1 %vm4391_vm2, %v4390_v59 }
 0x371   : > { %v2485_v43 = vpop.xlane.xlu1 %2484 }
 0x372   : > { %4150 = vrcp.f32 %v2485_v43 }
 0x375   : > { %v2494_v50 = vpop.xlane.xlu1 %2493 }
 0x376   : > { %4152 = vrcp.f32 %v2494_v50 }
 0x377   : > { %4154 = vrcp.f32 %v2497_v37 }
 0x378   : > { %4156 = vrcp.f32 %v2503_v27 }
 0x379   : > { %v2500_v8 = vpop.xlane.xlu1 %2499 }
 0x37a   : > { %4158 = vrcp.f32 %v2500_v8 }
 0x37f   : > { %v4151_v6 = vpop.eup %4150 }
 0x380   : > { %v2523_v32 = vmul.f32 %v4151_v6, %v5535_v2 }
 0x382   : > { %v2540_v1 = vpack.c.bf16 %v2523_v32, %v2521_v54 }
 0x383   : > { %v4153_v42 = vpop.eup %4152 }
 0x384   : > { %v4155_v60 = vpop.eup %4154  ;;  %3998 = vmatmul.mubr.msk.bf16.vlgmr.msra.gmra.mxu0 %vm2359_vm1, %v2540_v1  ;;  %v2529_v56 = vmul.f32 %v4153_v42, %v5542_v14 }
 0x385   : > { %v4157_v22 = vpop.eup %4156  ;;  %4008 = vmatpush3.bf16.msra.mxu0 %v2550_v19  ;;  %4009 = vmatprep.mubr.msk.bf16.mxu0 %vm4391_vm2, %v4390_v59  ;;  %v2531_v7 = vmul.f32 %v4155_v60, %v5502_v23 }
 0x386   : > { %v2535_v9 = vmul.f32 %v4157_v22, %v5508_v61 }
 0x387   : > { %v4159_v31 = vpop.eup %4158  ;;  %v2542_v2 = vpack.c.bf16 %v2531_v7, %v2529_v56 }
 0x388   : > { %v2533_v57 = vmul.f32 %v4159_v31, %v5547_v24 }
 0x38a   : > { %v2543_v47 = vpack.c.bf16 %v2535_v9, %v2533_v57 }
 0x38c   : > { %4010 = vmatmul.mubr.msk.bf16.vlgmr.msra.gmra.mxu0 %vm2359_vm1, %v2542_v2  ;;  %4016 = vmatmul.mubr.msk.bf16.vlgmr.msra.gmra.mxu1 %vm2359_vm1, %v2543_v47 }
 0x410   : > { %v2589_v34 = vpop.f32.mrf.mxu0  ;;  %v2633_v3 = vpop.f32.mrf.mxu1 }
 0x412   : > { %v3975_v4 = vpop.f32.mrf.mxu0  ;;  %v3981_v0 = vpop.f32.mrf.mxu1 }
 0x414   : > { %v2592_v59 = vpop.f32.mrf.mxu0  ;;  %v2636_v10 = vpop.f32.mrf.mxu1 }
 0x416   : > { %v3976_v14 = vpop.f32.mrf.mxu0  ;;  %v3982_v51 = vpop.f32.mrf.mxu1 }
 0x418   : > { %v2677_v39 = vpop.f32.mrf.mxu0  ;;  %v2721_v23 = vpop.f32.mrf.mxu1 }
 0x419   : > { %v2904_v15 = vcombine.low %v2589_v34, %v2677_v39  ;;  %v2905_v37 = vcombine.high %v2589_v34, %v2677_v39  ;;  %v2920_v43 = vcombine.low %v2633_v3, %v2721_v23  ;;  %v2921_v27 = vcombine.high %v2633_v3, %v2721_v23 }
 0x41a   : > { %v3987_v63 = vpop.f32.mrf.mxu0  ;;  %v3993_v24 = vpop.f32.mrf.mxu1 }
 0x41b   : > { %v2912_v36 = vrot.slane %v2904_v15, %v4766_v25  ;;  %v2919_v6 = vrot.slane %v2905_v37, %v4766_v25  ;;  %v2928_v54 = vrot.slane %v2920_v43, %v4766_v25  ;;  %v2935_v32 = vrot.slane %v2921_v27, %v4766_v25 }
 0x41c   : > { %v2680_v11 = vpop.f32.mrf.mxu0  ;;  %v2724_v61 = vpop.f32.mrf.mxu1 }
 0x41d   : > { %v3040_v20 = vcombine.low %v2592_v59, %v2680_v11  ;;  %v3041_v17 = vcombine.high %v2592_v59, %v2680_v11  ;;  %v3056_v26 = vcombine.low %v2636_v10, %v2724_v61  ;;  %v3057_v52 = vcombine.high %v2636_v10, %v2724_v61 }
 0x41e   : > { %v3988_v48 = vpop.f32.mrf.mxu0  ;;  %v3994_v53 = vpop.f32.mrf.mxu1  ;;  %v2968_v57 = vcombine.low %v2912_v36, %v2928_v54  ;;  %v2984_v9 = vcombine.low %v2919_v6, %v2935_v32  ;;  %v2969_v59 = vcombine.high %v2912_v36, %v2928_v54  ;;  %v2985_v10 = vcombine.high %v2919_v6, %v2935_v32 }
 0x41f   : > { %v5672_v28 = vrot.slane %v3040_v20, %v4766_v25  ;;  %v5675_v5 = vrot.slane %v3041_v17, %v4766_v25  ;;  %v5678_v19 = vrot.slane %v3056_v26, %v4766_v25  ;;  %v5681_v40 = vrot.slane %v3057_v52, %v4766_v25 }
 0x420   : > { %v2809_v35 = vpop.f32.mrf.mxu1  ;;  %v5700_v48 = vrot.slane %v2984_v9, %v4786_v38  ;;  %v2999_v6 = vrot.slane %v2985_v10, %v4786_v38 }
 0x421   : > { %v3104_v41 = vcombine.low %v5672_v28, %v5678_v19  ;;  %v3105_v13 = vcombine.high %v5672_v28, %v5678_v19  ;;  %v3120_v16 = vcombine.low %v5675_v5, %v5681_v40  ;;  %v3121_v46 = vcombine.high %v5675_v5, %v5681_v40  ;;  %v3516_v5 = vpop.permute.xlu1 %3515  ;;  %v3544_v40 = vpop.permute.xlu0 %3543 }
 0x422   : > { %v4005_v62 = vpop.f32.mrf.mxu1  ;;  %v5976_v28 = vcombine.high %v5417_v12, %v5402_v49 }
 0x424   : > { %v2812_v33 = vpop.f32.mrf.mxu1 }
 0x425   : > { %v3520_v19 = vpop.permute.xlu1 %3519 }
 0x426   : > { %v4006_v30 = vpop.f32.mrf.mxu1 }
 0x444   : > { %v2765_v18 = vpop.f32.mrf.mxu0 }
 0x446   : > { %v3999_v50 = vpop.f32.mrf.mxu0 }
 0x448   : > { %v2768_v8 = vpop.f32.mrf.mxu0 }
 0x44a   : > { %v4000_v1 = vpop.f32.mrf.mxu0 }
 0x44c   : > { %v2853_v42 = vpop.f32.mrf.mxu0  ;;  %v2897_v60 = vpop.f32.mrf.mxu1 }
 0x44d   : > { %v2936_v22 = vcombine.low %v2765_v18, %v2853_v42  ;;  %v2937_v56 = vcombine.high %v2765_v18, %v2853_v42  ;;  %v2952_v31 = vcombine.low %v2809_v35, %v2897_v60  ;;  %v2953_v7 = vcombine.high %v2809_v35, %v2897_v60 }
 0x44e   : > { %v4011_v2 = vpop.f32.mrf.mxu0  ;;  %v4017_v47 = vpop.f32.mrf.mxu1  ;;  %v5706_v35 = vrot.slane %v2968_v57, %v4786_v38  ;;  %v5737_v42 = vrot.slane %v3120_v16, %v4786_v38 }
 0x44f   : > { %v2944_v34 = vrot.slane %v2936_v22, %v4766_v25  ;;  %v2951_v3 = vrot.slane %v2937_v56, %v4766_v25  ;;  %v2960_v4 = vrot.slane %v2952_v31, %v4766_v25  ;;  %v2967_v0 = vrot.slane %v2953_v7, %v4766_v25 }
 0x450   : > { %v2856_v14 = vpop.f32.mrf.mxu0  ;;  %v2900_v51 = vpop.f32.mrf.mxu1  ;;  %v5745_v31 = vrot.slane %v3104_v41, %v4786_v38 }
 0x451   : > { %v3000_v39 = vcombine.low %v2944_v34, %v2960_v4  ;;  %v3001_v23 = vcombine.high %v2944_v34, %v2960_v4  ;;  %v3016_v63 = vcombine.low %v2951_v3, %v2967_v0  ;;  %v3017_v24 = vcombine.high %v2951_v3, %v2967_v0 }
 0x452   : > { %v3072_v11 = vcombine.low %v2768_v8, %v2856_v14  ;;  %v3073_v61 = vcombine.high %v2768_v8, %v2856_v14  ;;  %v3088_v20 = vcombine.low %v2812_v33, %v2900_v51  ;;  %v3089_v17 = vcombine.high %v2812_v33, %v2900_v51  ;;  %v4012_v26 = vpop.f32.mrf.mxu0  ;;  %v4018_v52 = vpop.f32.mrf.mxu1 }
 0x453   : > { %v5703_v53 = vrot.slane %v3016_v63, %v4786_v38  ;;  %v5709_v62 = vrot.slane %v3000_v39, %v4786_v38  ;;  %v3031_v27 = vrot.slane %v3017_v24, %v4786_v38  ;;  %v3015_v50 = vrot.slane %v3001_v23, %v4786_v38 }
 0x454   : > { %v3080_v30 = vrot.slane %v3072_v11, %v4766_v25  ;;  %v3087_v18 = vrot.slane %v3073_v61, %v4766_v25  ;;  %v3096_v33 = vrot.slane %v3088_v20, %v4766_v25  ;;  %v3103_v15 = vrot.slane %v3089_v17, %v4766_v25 }
 0x455   : > { %v3037_v37 = vcombine.high %v5700_v48, %v5703_v53  ;;  %v3033_v43 = vcombine.high %v5706_v35, %v5709_v62  ;;  %v2983_v25 = vrot.slane %v2969_v59, %v4786_v38  ;;  %v3036_v54 = vcombine.low %v5700_v48, %v5703_v53 }
 0x456   : > { %v3136_v8 = vcombine.low %v3080_v30, %v3096_v33  ;;  %v3152_v36 = vcombine.low %v3087_v18, %v3103_v15  ;;  %v3038_v60 = vcombine.low %v2999_v6, %v3031_v27  ;;  %v3032_v56 = vcombine.low %v5706_v35, %v5709_v62 }
 0x457   : > { %3189 = vrot.lane.b32.xlu1 %v3037_v37, %s4381_s17  ;;  %3177 = vrot.lane.b32.xlu0 %v3033_v43, %s4381_s17  ;;  %v3034_v22 = vcombine.low %v2983_v25, %v3015_v50  ;;  %v3137_v57 = vcombine.high %v3080_v30, %v3096_v33  ;;  %v3153_v9 = vcombine.high %v3087_v18, %v3103_v15 }
 0x458   : > { %v5728_v32 = vrot.slane %v3136_v8, %v4786_v38  ;;  %v5731_v1 = vrot.slane %v3152_v36, %v4786_v38  ;;  %v3039_v2 = vcombine.high %v2999_v6, %v3031_v27  ;;  %v3035_v47 = vcombine.high %v2983_v25, %v3015_v50 }
 0x459   : > { %v3151_v41 = vrot.slane %v3137_v57, %v4786_v38  ;;  %v3167_v34 = vrot.slane %v3153_v9, %v4786_v38  ;;  %v3119_v0 = vrot.slane %v3105_v13, %v4786_v38  ;;  %v3135_v59 = vrot.slane %v3121_v46, %v4786_v38  ;;  %v3548_v13 = vpop.permute.xlu1 %3547  ;;  %v3524_v46 = vpop.permute.xlu0 %3523 }
 0x45a   : > { %v3172_v7 = vcombine.low %v5737_v42, %v5731_v1  ;;  %v3168_v16 = vcombine.low %v5745_v31, %v5728_v32  ;;  %v3173_v3 = vcombine.high %v5737_v42, %v5731_v1  ;;  %v3169_v4 = vcombine.high %v5745_v31, %v5728_v32 }
 0x45b   : > { %3193 = vrot.lane.b32.xlu1 %v3038_v60, %s4383_s15  ;;  %3181 = vrot.lane.b32.xlu0 %v3034_v22, %s4383_s15  ;;  %v3174_v10 = vcombine.low %v3135_v59, %v3167_v34  ;;  %v3170_v14 = vcombine.low %v3119_v0, %v3151_v41  ;;  %v3175_v51 = vcombine.high %v3135_v59, %v3167_v34 }
 0x45c   : > { %v3171_v39 = vcombine.high %v3119_v0, %v3151_v41  ;;  %v5975_v38 = vcombine.high %v5414_v45, %v5399_v58  ;;  %v5977_v33 = vcombine.low %v5411_v21, %v5405_v44  ;;  %v5978_v21 = vcombine.low %v5408_v29, %v5396_v55 }
 0x45d   : > { %v3552_v23 = vpop.permute.xlu1 %3551  ;;  %v3528_v63 = vpop.permute.xlu0 %3527 }
 0x45e   : > { %v3570_v15 = vsel %vm2359_vm1, %v5977_v33, %v3516_v5  ;;  %v3580_v44 = vsel %vm2359_vm1, %v5978_v21, %v3544_v40 }
 0x45f   : > { %3197 = vrot.lane.b32.xlu1 %v3039_v2, %s4382_s16  ;;  %3185 = vrot.lane.b32.xlu0 %v3035_v47, %s4382_s16  ;;  %v3571_v37 = vsel %vm1630_vm0, %v3570_v15, %v3520_v19  ;;  %v3581_v60 = vsel %vm1630_vm0, %v3580_v44, %v3548_v13 }
 0x460   : > { %v3573_v50 = vsel %vm3572_vm5, %v3571_v37, %v3524_v46  ;;  %v3582_v32 = vsel %vm3572_vm5, %v3581_v60, %v3552_v23 }
 0x461   : > { %v3556_v24 = vpop.permute.xlu1 %3555  ;;  %v3532_v11 = vpop.permute.xlu0 %3531  ;;  %v3574_v6 = vsel %vm3225_vm3, %v3573_v50, %v3528_v63 }
 0x462   : > { %v3576_v31 = vsel %vm3575_vm6, %v3574_v6, %v3532_v11 }
 0x463   : > { %3213 = vrot.lane.b32.xlu1 %v3173_v3, %s4381_s17  ;;  %3201 = vrot.lane.b32.xlu0 %v3169_v4, %s4381_s17 }
 0x465   : > { %v3560_v61 = vpop.permute.xlu1 %3559  ;;  %v5783_v20 = vpop.permute.xlu0 %3535 }
 0x467   : > { %3217 = vrot.lane.b32.xlu1 %v3174_v10, %s4383_s15  ;;  %3205 = vrot.lane.b32.xlu0 %v3170_v14, %s4383_s15 }
 0x469   : > { %v5785_v58 = vpop.permute.xlu1 %3563 }
 0x46b   : > { %3221 = vrot.lane.b32.xlu1 %v3175_v51, %s4382_s16  ;;  %3209 = vrot.lane.b32.xlu0 %v3171_v39, %s4382_s16 }
 0x46f   : > { %3567 = vrot.lane.b32.xlu1 %v5975_v38, %s4384_s28  ;;  %3539 = vrot.lane.b32.xlu0 %v5976_v28, %s4384_s28 }
 0x4c9   : > { %v3190_v45 = vpop.permute.xlu1 %3189  ;;  %v3178_v17 = vpop.permute.xlu0 %3177 }
 0x4ca   : > { %v3229_v12 = vsel %vm1630_vm0, %v3036_v54, %v3190_v45  ;;  %v3224_v52 = vsel %vm1630_vm0, %v3032_v56, %v3178_v17 }
 0x4cd   : > { %v3194_v26 = vpop.permute.xlu1 %3193  ;;  %v3182_v49 = vpop.permute.xlu0 %3181 }
 0x4ce   : > { %v3230_v48 = vsel %vm3225_vm3, %v3229_v12, %v3194_v26  ;;  %v3226_v53 = vsel %vm3225_vm3, %v3224_v52, %v3182_v49 }
 0x4d1   : > { %v3198_v35 = vpop.permute.xlu1 %3197  ;;  %v3186_v62 = vpop.permute.xlu0 %3185 }
 0x4d2   : > { %v3231_v30 = vsel %vm3227_vm4, %v3230_v48, %v3198_v35  ;;  %v3228_v18 = vsel %vm3227_vm4, %v3226_v53, %v3186_v62 }
 0x4d3   : > { %3239 = vst [vmem:[%s5794_s8 + $0x8] sm:$0xff] %v3231_v30  ;;  %3238 = vst [vmem:[%s5794_s8] sm:$0xff] %v3228_v18 }
 0x4d5   : > { %v3214_v43 = vpop.permute.xlu1 %3213  ;;  %v3202_v27 = vpop.permute.xlu0 %3201 }
 0x4d6   : > { %v3235_v25 = vsel %vm1630_vm0, %v3172_v7, %v3214_v43  ;;  %v3232_v54 = vsel %vm1630_vm0, %v3168_v16, %v3202_v27  ;;  %v3583_v7 = vsel %vm3225_vm3, %v3582_v32, %v3556_v24 }
 0x4d7   : > { %v3584_v16 = vsel %vm3575_vm6, %v3583_v7, %v3560_v61 }
 0x4d9   : > { %v3218_v8 = vpop.permute.xlu1 %3217  ;;  %v3206_v36 = vpop.permute.xlu0 %3205 }
 0x4da   : > { %v3236_v22 = vsel %vm3225_vm3, %v3235_v25, %v3218_v8  ;;  %v3233_v29 = vsel %vm3225_vm3, %v3232_v54, %v3206_v36 }
 0x4dd   : > { %v3222_v55 = vpop.permute.xlu1 %3221  ;;  %v3210_v56 = vpop.permute.xlu0 %3209 }
 0x4de   : > { %v3237_v1 = vsel %vm3227_vm4, %v3236_v22, %v3222_v55  ;;  %v3234_v42 = vsel %vm3227_vm4, %v3233_v29, %v3210_v56 }
 0x4df   : > { %3241 = vst [vmem:[%s5794_s8 + $0x18] sm:$0xff] %v3237_v1  ;;  %3240 = vst [vmem:[%s5794_s8 + $0x10] sm:$0xff] %v3234_v42 }
 0x4e0   : > { %4286 = shalt.err (!%p4283_p12)
}
 0x4e1   : > { %s4287_s17 = scalar_lea.hbm %s5825_s11, 512  ;;  %s4291_s28 = scalar_lea.hbm %s5926_s4, 1024 }
 0x4e2   : > { %p4288_p4 = scmp.ne.s32.totalorder %s5825_s11, %s4287_s17  ;;  %p4292_p6 = scmp.lt.s32.totalorder %s5825_s11, %s5926_s4 }
 0x4e3   : > { %p4293_p8 = scmp.lt.s32.totalorder %s4291_s28, %s4287_s17 }
 0x4e4   : > { %p4289_p5 = pnand %p4288_p4, %p5979_p10 }
 0x4e5   : > { %p4294_p2 = por %p4293_p8, %p4292_p6 }
 0x4e6   : > { %p4290_p7 = pneg %p4289_p5 }
 0x4e8   : > { %p4295_p13 = pnand %p4294_p2, %p4290_p7 }
 0x4ea   : > { %4298 = shalt.err (!%p4295_p13)
}
 0x4eb   : > { %4027 = dma.vmem_to_hbm [thread:$0]  (%p5979_p10), %s5827_s20, 512, %s5825_s11, %s3590_s13   ;;  %v3585_v57 = vsel %vm3227_vm4, %v3584_v16, %v5785_v58  ;;  %v3568_v9 = vpop.permute.xlu1 %3567  ;;  %v3577_v2 = vsel %vm3227_vm4, %v3576_v31, %v5783_v20  ;;  %v3540_v47 = vpop.permute.xlu0 %3539 }
 0x4ec   : > { %s5873_s6 = scalar_lea.hbm %s5927_s5, %s3866_s24  ;;  %v3586_v41 = vsel %vm3578_vm7, %v3585_v57, %v3568_v9  ;;  %v3579_v34 = vsel %vm3578_vm7, %v3577_v2, %v3540_v47  ;;  %s3595_s20 = scalar_lea.sflag [#allocation12], %s4601_s23 }
 0x4ed   : > { %3588 = vst [vmem:[%s5834_s12 + $0x8] sm:$0xff] %v3586_v41  ;;  %3587 = vst [vmem:[%s5834_s12] sm:$0xff] %v3579_v34  ;;  %s4299_s26 = scalar_lea.vmem %s5877_s9, 256  ;;  %s4393_s22 = smov [#allocation11]  }
 0x4ee   : > { %p4300_p1 = scmp.ne.s32.totalorder %s5877_s9, %s4299_s26  ;;  %s4303_s0 = sshll.u32 %s4393_s22, 4  ;;  %s4304_s0 = int_to_ptr.vmem [resolvable:$false] %s4303_s0 }
 0x4ef   : > { %s4305_s11 = scalar_lea.vmem %s4304_s0, 512  ;;  %p4306_p0 = scmp.lt.s32.totalorder %s5877_s9, %s4304_s0 }
 0x4f0   : > { %p4301_p3 = pnand %p4300_p1, %p5979_p10  ;;  %p4307_p11 = scmp.lt.s32.totalorder %s4305_s11, %s4299_s26 }
 0x4f2   : > { %p4302_p9 = pneg %p4301_p3  ;;  %p4308_p12 = por %p4307_p11, %p4306_p0 }
 0x4f4   : > { %p4309_p4 = pnand %p4308_p12, %p4302_p9 }
 0x4f6   : > { %4312 = shalt.err (!%p4309_p4)
}
 0x4f7   : > { %s4313_s12 = scalar_lea.hbm %s5873_s6, 256  ;;  %s4317_s13 = scalar_lea.hbm %s5927_s5, 512 }
 0x4f8   : > { %p4314_p5 = scmp.ne.s32.totalorder %s5873_s6, %s4313_s12  ;;  %p4318_p8 = scmp.lt.s32.totalorder %s5873_s6, %s5927_s5 }
 0x4f9   : > { %p4319_p2 = scmp.lt.s32.totalorder %s4317_s13, %s4313_s12 }
 0x4fa   : > { %p4315_p7 = pnand %p4314_p5, %p5979_p10 }
 0x4fb   : > { %p4320_p13 = por %p4319_p2, %p4318_p8 }
 0x4fc   : > { %p4316_p6 = pneg %p4315_p7 }
 0x4fe   : > { %p4321_p1 = pnand %p4320_p13, %p4316_p6 }
 0x500   : > { %4324 = shalt.err (!%p4321_p1)
}
 0x501   : > { %4028 = dma.vmem_to_hbm [thread:$0]  (%p5979_p10), %s5877_s9, 256, %s5873_s6, %s3595_s20  }
 0x502 PF: > { %s5980_s1 = sld [smem:[#allocation21_spill]]  ;;  %s3635_s30 = sand.u32 1, %s4363_s18  }
 0x503   : > { %p5982_p9 = scmp.ge.s32.totalorder %s4375_s21, 2  ;;  %s3636_s17 = scalar_lea.sflag [#allocation4], %s3635_s30 }
 0x508   : > { %p5981_p3 = scmp.ne.s32.totalorder %s5980_s1, 0 }
 0x50a   : > { %p4045_p0 = pnand %p5982_p9, %p5981_p3 }
 0x50c   : > { %p4046_p11 = pneg %p4045_p0 }
 0x50e   : > { %4354 = dma.done.wait (%p4046_p11), %s3636_s17, 512  }
 0x50f   : > { %4356 = vsyncadd (%p4046_p11), %s3636_s17, 4294966784  ;;  %s3645_s16 = scalar_lea.sflag [#allocation12], %s3635_s30 }
 0x510   : > { %4358 = dma.done.wait (%p4046_p11), %s3645_s16, 256  }
 0x511   : > { %4360 = vsyncadd (%p4046_p11), %s3645_s16, 4294967040  ;;  %s5983_s21 = sld [smem:[#allocation19_spill]]  ;;  %s5986_s18 = smov %s4367_s19 }
 0x512   : > { %s5984_s29 = sld [smem:[#allocation18_spill]] }
 0x513   : > { %s5985_s20 = sld [smem:[#allocation20_spill]] }
 0x517   : > { %p28_p10 = scmp.ge.s32.totalorder %s5983_s21, 4  }
 0x518   : > { %s5987_s19 = smov %s5984_s29 }
 0x519   :  { %30 = sbr.rel (!%p28_p10) target bundleno = 14 (0xe), region = 135 }
 0x51e   :  { %3650 = vsyncpa [#allocation3], 1 }
 0x51f   :  { %3652 = vsyncpa [#allocation3 + $0x1], 1 }
 0x520   :  { %3653 = vsyncpa [#allocation6], 1 }
 0x521   :  { %3655 = vsyncpa [#allocation6 + $0x1], 1 }
 0x522   :  { %3656 = vsyncpa [#allocation9], 1 }
 0x523   :  { %3658 = vsyncpa [#allocation9 + $0x1], 1 }
 0x524   :  { %3659 = vsyncpa [#allocation4], 1 }
 0x525   :  { %3661 = vsyncpa [#allocation4 + $0x1], 1 }
 0x526   :  { %3662 = vsyncpa [#allocation12], 1 }
 0x527   :  { %3664 = vsyncpa [#allocation12 + $0x1], 1 }

</bundles_post_ra>
